<compile_context>
chip_gen: v6e
topology: v6e:2x2x1
jax: 0.10.0
libtpu: 0.0.40
codegen_flags: <defaults>
</compile_context>

<pallas_src>
import jax
import jax.numpy as jnp
from jax.experimental import pallas as pl
from jax.experimental.pallas import tpu as pltpu

# ---------------- mini model config ----------------
VOCAB = 64
TYPE_VOCAB = 2
MAX_POS = 16
HIDDEN = 128
HEADS = 2
HEAD_DIM = HIDDEN // HEADS
INTERMEDIATE = 256
LAYERS = 2
LN_EPS = 1e-12

BATCH = 2
SEQ = 8


# ---------------- fused encoder kernel (one sequence per grid step) ---------
def _encoder_kernel(emb_ref, bias_ref, mask_ref,
                    eg_ref, eb_ref,
                    wqkv_ref, bqkv_ref, wo_ref, bo_ref,
                    ln1g_ref, ln1b_ref,
                    w1_ref, b1_ref, w2_ref, b2_ref,
                    ln2g_ref, ln2b_ref,
                    out_ref):
    def layer_norm(h, g, b):
        mu = jnp.mean(h, axis=-1, keepdims=True)
        c = h - mu
        var = jnp.mean(c * c, axis=-1, keepdims=True)
        return c * jax.lax.rsqrt(var + LN_EPS) * g + b

    # embedding LayerNorm (no residual)
    x = layer_norm(emb_ref[0], eg_ref[...], eb_ref[...])        # (S, D) f32
    bias = bias_ref[0]                                          # (1, S) additive mask
    scale = 1.0 / (HEAD_DIM ** 0.5)

    for l in range(LAYERS):                                     # unrolled (LAYERS=2)
        # ---- fused QKV projection: one (S,128)@(128,384) matmul ----
        qkv = jnp.dot(x.astype(jnp.bfloat16), wqkv_ref[l],
                      preferred_element_type=jnp.float32) + bqkv_ref[l]
        q = qkv[:, 0:HIDDEN] * scale                            # scale q, not scores
        k = qkv[:, HIDDEN:2 * HIDDEN]
        v = qkv[:, 2 * HIDDEN:3 * HIDDEN]

        # ---- multi-head attention, heads split/merged in-kernel ----
        ctx_heads = []
        for h in range(HEADS):
            lo, hi = h * HEAD_DIM, (h + 1) * HEAD_DIM
            qh = q[:, lo:hi].astype(jnp.bfloat16)
            kh = k[:, lo:hi].astype(jnp.bfloat16)
            vh = v[:, lo:hi].astype(jnp.bfloat16)
            s = jnp.einsum('qd,kd->qk', qh, kh,
                           preferred_element_type=jnp.float32)  # (S, S) f32
            s = s + bias                                        # broadcast over queries
            s = s - jnp.max(s, axis=-1, keepdims=True)          # stable softmax (f32)
            p = jnp.exp(s)
            p = p * pl.reciprocal(jnp.sum(p, axis=-1, keepdims=True), approx=True)
            ctx_heads.append(
                jnp.dot(p.astype(jnp.bfloat16), vh,
                        preferred_element_type=jnp.float32))    # (S, Dh)
        ctx = jnp.concatenate(ctx_heads, axis=-1)               # (S, D) lane-dense

        # ---- output projection + residual + LN1 (fused epilogue) ----
        attn_out = jnp.dot(ctx.astype(jnp.bfloat16), wo_ref[l],
                           preferred_element_type=jnp.float32) + bo_ref[l]
        x = layer_norm(attn_out + x, ln1g_ref[l], ln1b_ref[l])

        # ---- FFN: dense -> GELU -> dense, + residual + LN2 ----
        inter = jnp.dot(x.astype(jnp.bfloat16), w1_ref[l],
                        preferred_element_type=jnp.float32) + b1_ref[l]
        # TODO(synk): HF BERT uses exact erf-GELU; tanh approximation used here.
        inter = jax.nn.gelu(inter)
        ffn = jnp.dot(inter.astype(jnp.bfloat16), w2_ref[l],
                      preferred_element_type=jnp.float32) + b2_ref[l]
        x = layer_norm(ffn + x, ln2g_ref[l], ln2b_ref[l])

    # ---- mask-weighted mean pooling + L2 normalize ----
    m = mask_ref[0]                                             # (S, 1)
    summed = jnp.sum(x * m, axis=0, keepdims=True)              # (1, D)
    counts = jnp.maximum(jnp.sum(m, axis=0, keepdims=True), 1e-9)
    semb = summed / counts
    norm = jnp.sqrt(jnp.sum(semb * semb, axis=-1, keepdims=True))
    out_ref[0] = semb / jnp.maximum(norm, 1e-12)                # F.normalize(p=2, dim=1)


# ---------------- parameter init (deterministic, synthetic) ----------------
def init_params(key):
    def nrm(k, shape):
        return jax.random.normal(k, shape, jnp.float32) * 0.02

    k = jax.random.split(key, 8)
    return {
        'word_emb': nrm(k[0], (VOCAB, HIDDEN)),
        'pos_emb': nrm(k[1], (MAX_POS, HIDDEN)),
        'type_emb': nrm(k[2], (TYPE_VOCAB, HIDDEN)),
        'emb_ln_g': jnp.ones((1, HIDDEN), jnp.float32),
        'emb_ln_b': jnp.zeros((1, HIDDEN), jnp.float32),
        # stacked per-layer weights; matmul weights in bf16 (f32 accumulation)
        'wqkv': nrm(k[3], (LAYERS, HIDDEN, 3 * HIDDEN)).astype(jnp.bfloat16),
        'bqkv': jnp.zeros((LAYERS, 1, 3 * HIDDEN), jnp.float32),
        'wo': nrm(k[4], (LAYERS, HIDDEN, HIDDEN)).astype(jnp.bfloat16),
        'bo': jnp.zeros((LAYERS, 1, HIDDEN), jnp.float32),
        'ln1_g': jnp.ones((LAYERS, 1, HIDDEN), jnp.float32),
        'ln1_b': jnp.zeros((LAYERS, 1, HIDDEN), jnp.float32),
        'w1': nrm(k[5], (LAYERS, HIDDEN, INTERMEDIATE)).astype(jnp.bfloat16),
        'b1': jnp.zeros((LAYERS, 1, INTERMEDIATE), jnp.float32),
        'w2': nrm(k[6], (LAYERS, INTERMEDIATE, HIDDEN)).astype(jnp.bfloat16),
        'b2': jnp.zeros((LAYERS, 1, HIDDEN), jnp.float32),
        'ln2_g': jnp.ones((LAYERS, 1, HIDDEN), jnp.float32),
        'ln2_b': jnp.zeros((LAYERS, 1, HIDDEN), jnp.float32),
    }


# ---------------- forward pass (mirrors PyTorch_to_TorchScript.forward) -----
def encoder_forward(params, input_ids, token_type_ids, attention_mask):
    B, S = input_ids.shape
    pos_ids = jnp.arange(S)

    # embedding lookups (gather) are glue in plain JAX
    emb = (params['word_emb'][input_ids]
           + params['pos_emb'][pos_ids][None, :, :]
           + params['type_emb'][token_type_ids]).astype(jnp.float32)   # (B, S, D)

    mask_f = attention_mask.astype(jnp.float32)
    attn_bias = ((1.0 - mask_f) * -1e9).reshape(B, 1, S)
    pool_mask = mask_f.reshape(B, S, 1)

    per_seq = lambda b: (b, 0, 0)           # one sequence per grid step
    shared2 = lambda b: (0, 0)              # weights stay resident across steps
    shared3 = lambda b: (0, 0, 0)

    out = pl.pallas_call(
        _encoder_kernel,
        out_shape=jax.ShapeDtypeStruct((B, 1, HIDDEN), jnp.float32),
        grid=(B,),
        in_specs=[
            pl.BlockSpec((1, S, HIDDEN), per_seq),                 # emb
            pl.BlockSpec((1, 1, S), per_seq),                      # attn bias
            pl.BlockSpec((1, S, 1), per_seq),                      # pooling mask
            pl.BlockSpec((1, HIDDEN), shared2),                    # emb LN gamma
            pl.BlockSpec((1, HIDDEN), shared2),                    # emb LN beta
            pl.BlockSpec((LAYERS, HIDDEN, 3 * HIDDEN), shared3),   # wqkv
            pl.BlockSpec((LAYERS, 1, 3 * HIDDEN), shared3),        # bqkv
            pl.BlockSpec((LAYERS, HIDDEN, HIDDEN), shared3),       # wo
            pl.BlockSpec((LAYERS, 1, HIDDEN), shared3),            # bo
            pl.BlockSpec((LAYERS, 1, HIDDEN), shared3),            # ln1_g
            pl.BlockSpec((LAYERS, 1, HIDDEN), shared3),            # ln1_b
            pl.BlockSpec((LAYERS, HIDDEN, INTERMEDIATE), shared3), # w1
            pl.BlockSpec((LAYERS, 1, INTERMEDIATE), shared3),      # b1
            pl.BlockSpec((LAYERS, INTERMEDIATE, HIDDEN), shared3), # w2
            pl.BlockSpec((LAYERS, 1, HIDDEN), shared3),            # b2
            pl.BlockSpec((LAYERS, 1, HIDDEN), shared3),            # ln2_g
            pl.BlockSpec((LAYERS, 1, HIDDEN), shared3),            # ln2_b
        ],
        out_specs=pl.BlockSpec((1, 1, HIDDEN), per_seq),
        compiler_params=pltpu.CompilerParams(
            dimension_semantics=("parallel",)),                    # v7x: 1 seq / TC
    )(emb, attn_bias, pool_mask,
      params['emb_ln_g'], params['emb_ln_b'],
      params['wqkv'], params['bqkv'], params['wo'], params['bo'],
      params['ln1_g'], params['ln1_b'],
      params['w1'], params['b1'], params['w2'], params['b2'],
      params['ln2_g'], params['ln2_b'])

    return out.reshape(B, HIDDEN)


if __name__ == "__main__":
    key = jax.random.PRNGKey(0)
    pkey, ikey = jax.random.split(key)
    params = init_params(pkey)

    # synthetic "tokenized sentences": two sequences, second one padded
    input_ids = jax.random.randint(ikey, (BATCH, SEQ), 0, VOCAB, dtype=jnp.int32)
    token_type_ids = jnp.zeros((BATCH, SEQ), dtype=jnp.int32)
    attention_mask = jnp.array([[1] * SEQ,
                                [1] * 5 + [0] * (SEQ - 5)], dtype=jnp.int32)

    fwd = jax.jit(encoder_forward)
    out = fwd(params, input_ids, token_type_ids, attention_mask)
    jax.block_until_ready(out)
    assert out.shape == (BATCH, HIDDEN)
    print("KERNEL_OK")
</pallas_src>

<mosaic_0001>
module attributes {stable_mosaic.version = 11 : i64} {
  func.func @_encoder_kernel(%arg0: i32, %arg1: memref<1x8x128xf32, #tpu.memory_space<vmem>>, %arg2: memref<1x1x8xf32, #tpu.memory_space<vmem>>, %arg3: memref<1x8x1xf32, #tpu.memory_space<vmem>>, %arg4: memref<1x128xf32, #tpu.memory_space<vmem>>, %arg5: memref<1x128xf32, #tpu.memory_space<vmem>>, %arg6: memref<2x128x384xbf16, #tpu.memory_space<vmem>>, %arg7: memref<2x1x384xf32, #tpu.memory_space<vmem>>, %arg8: memref<2x128x128xbf16, #tpu.memory_space<vmem>>, %arg9: memref<2x1x128xf32, #tpu.memory_space<vmem>>, %arg10: memref<2x1x128xf32, #tpu.memory_space<vmem>>, %arg11: memref<2x1x128xf32, #tpu.memory_space<vmem>>, %arg12: memref<2x128x256xbf16, #tpu.memory_space<vmem>>, %arg13: memref<2x1x256xf32, #tpu.memory_space<vmem>>, %arg14: memref<2x256x128xbf16, #tpu.memory_space<vmem>>, %arg15: memref<2x1x128xf32, #tpu.memory_space<vmem>>, %arg16: memref<2x1x128xf32, #tpu.memory_space<vmem>>, %arg17: memref<2x1x128xf32, #tpu.memory_space<vmem>>, %arg18: memref<1x1x128xf32, #tpu.memory_space<vmem>>) attributes {dimension_semantics = [#tpu.dimension_semantics<parallel>], iteration_bounds = array<i64: 2>, scalar_prefetch = 0 : i64, scratch_operands = 0 : i64, tpu.core_type = #tpu.core_type<tc>, window_params = [{transform_indices = @transform_0, window_bounds = array<i64: 1, 8, 128>}, {transform_indices = @transform_1, window_bounds = array<i64: 1, 1, 8>}, {transform_indices = @transform_2, window_bounds = array<i64: 1, 8, 1>}, {pipeline_mode = #tpu.pipeline_mode<synchronous>, transform_indices = @transform_3, window_bounds = array<i64: 1, 128>}, {pipeline_mode = #tpu.pipeline_mode<synchronous>, transform_indices = @transform_4, window_bounds = array<i64: 1, 128>}, {pipeline_mode = #tpu.pipeline_mode<synchronous>, transform_indices = @transform_5, window_bounds = array<i64: 2, 128, 384>}, {pipeline_mode = #tpu.pipeline_mode<synchronous>, transform_indices = @transform_6, window_bounds = array<i64: 2, 1, 384>}, {pipeline_mode = #tpu.pipeline_mode<synchronous>, transform_indices = @transform_7, window_bounds = array<i64: 2, 128, 128>}, {pipeline_mode = #tpu.pipeline_mode<synchronous>, transform_indices = @transform_8, window_bounds = array<i64: 2, 1, 128>}, {pipeline_mode = #tpu.pipeline_mode<synchronous>, transform_indices = @transform_9, window_bounds = array<i64: 2, 1, 128>}, {pipeline_mode = #tpu.pipeline_mode<synchronous>, transform_indices = @transform_10, window_bounds = array<i64: 2, 1, 128>}, {pipeline_mode = #tpu.pipeline_mode<synchronous>, transform_indices = @transform_11, window_bounds = array<i64: 2, 128, 256>}, {pipeline_mode = #tpu.pipeline_mode<synchronous>, transform_indices = @transform_12, window_bounds = array<i64: 2, 1, 256>}, {pipeline_mode = #tpu.pipeline_mode<synchronous>, transform_indices = @transform_13, window_bounds = array<i64: 2, 256, 128>}, {pipeline_mode = #tpu.pipeline_mode<synchronous>, transform_indices = @transform_14, window_bounds = array<i64: 2, 1, 128>}, {pipeline_mode = #tpu.pipeline_mode<synchronous>, transform_indices = @transform_15, window_bounds = array<i64: 2, 1, 128>}, {pipeline_mode = #tpu.pipeline_mode<synchronous>, transform_indices = @transform_16, window_bounds = array<i64: 2, 1, 128>}, {transform_indices = @transform_17, window_bounds = array<i64: 1, 1, 128>}]} {
    %c0 = arith.constant 0 : index
    %c0_0 = arith.constant 0 : index
    %c0_1 = arith.constant 0 : index
    %0 = vector.load %arg1[%c0, %c0_0, %c0_1] : memref<1x8x128xf32, #tpu.memory_space<vmem>>, vector<1x8x128xf32>
    %1 = vector.shape_cast %0 : vector<1x8x128xf32> to vector<8x128xf32>
    %c0_2 = arith.constant 0 : index
    %c0_3 = arith.constant 0 : index
    %2 = vector.load %arg4[%c0_2, %c0_3] : memref<1x128xf32, #tpu.memory_space<vmem>>, vector<1x128xf32>
    %c0_4 = arith.constant 0 : index
    %c0_5 = arith.constant 0 : index
    %3 = vector.load %arg5[%c0_4, %c0_5] : memref<1x128xf32, #tpu.memory_space<vmem>>, vector<1x128xf32>
    %cst = arith.constant dense<0.000000e+00> : vector<8xf32>
    %4 = vector.multi_reduction <add>, %1, %cst [1] : vector<8x128xf32> to vector<8xf32>
    %5 = vector.shape_cast %4 : vector<8xf32> to vector<8x1xf32>
    %cst_6 = arith.constant 1.280000e+02 : f32
    %6 = vector.broadcast %cst_6 : f32 to vector<8x1xf32>
    %7 = arith.divf %5, %6 : vector<8x1xf32>
    %8 = vector.broadcast %7 : vector<8x1xf32> to vector<8x128xf32>
    %9 = arith.subf %1, %8 : vector<8x128xf32>
    %10 = arith.mulf %9, %9 : vector<8x128xf32>
    %cst_7 = arith.constant dense<0.000000e+00> : vector<8xf32>
    %11 = vector.multi_reduction <add>, %10, %cst_7 [1] : vector<8x128xf32> to vector<8xf32>
    %12 = vector.shape_cast %11 : vector<8xf32> to vector<8x1xf32>
    %cst_8 = arith.constant 1.280000e+02 : f32
    %13 = vector.broadcast %cst_8 : f32 to vector<8x1xf32>
    %14 = arith.divf %12, %13 : vector<8x1xf32>
    %cst_9 = arith.constant 9.99999996E-13 : f32
    %15 = vector.broadcast %cst_9 : f32 to vector<8x1xf32>
    %16 = arith.addf %14, %15 : vector<8x1xf32>
    %17 = math.rsqrt %16 : vector<8x1xf32>
    %18 = vector.broadcast %17 : vector<8x1xf32> to vector<8x128xf32>
    %19 = arith.mulf %9, %18 : vector<8x128xf32>
    %20 = vector.broadcast %2 : vector<1x128xf32> to vector<8x128xf32>
    %21 = arith.mulf %19, %20 : vector<8x128xf32>
    %22 = vector.broadcast %3 : vector<1x128xf32> to vector<8x128xf32>
    %23 = arith.addf %21, %22 : vector<8x128xf32>
    %c0_10 = arith.constant 0 : index
    %c0_11 = arith.constant 0 : index
    %c0_12 = arith.constant 0 : index
    %24 = vector.load %arg2[%c0_10, %c0_11, %c0_12] : memref<1x1x8xf32, #tpu.memory_space<vmem>>, vector<1x1x8xf32>
    %25 = vector.shape_cast %24 : vector<1x1x8xf32> to vector<1x8xf32>
    %26 = arith.truncf %23 : vector<8x128xf32> to vector<8x128xbf16>
    %c0_13 = arith.constant 0 : index
    %c0_14 = arith.constant 0 : index
    %c0_15 = arith.constant 0 : index
    %27 = vector.load %arg6[%c0_13, %c0_14, %c0_15] : memref<2x128x384xbf16, #tpu.memory_space<vmem>>, vector<1x128x384xbf16>
    %28 = vector.shape_cast %27 : vector<1x128x384xbf16> to vector<128x384xbf16>
    %cst_16 = arith.constant dense<0.000000e+00> : vector<8x384xf32>
    %29 = tpu.matmul %26, %28, %cst_16 {dimension_numbers = #tpu.dot_dimension_numbers<[1], [0], [0], [1], [0, 0, 1, 1], [], []>} : vector<8x128xbf16>, vector<128x384xbf16>, vector<8x384xf32> -> vector<8x384xf32>
    %c0_17 = arith.constant 0 : index
    %c0_18 = arith.constant 0 : index
    %c0_19 = arith.constant 0 : index
    %30 = vector.load %arg7[%c0_17, %c0_18, %c0_19] : memref<2x1x384xf32, #tpu.memory_space<vmem>>, vector<1x1x384xf32>
    %31 = vector.shape_cast %30 : vector<1x1x384xf32> to vector<1x384xf32>
    %32 = vector.broadcast %31 : vector<1x384xf32> to vector<8x384xf32>
    %33 = arith.addf %29, %32 : vector<8x384xf32>
    %34 = vector.extract_strided_slice %33 {offsets = [0, 0], sizes = [8, 128], strides = [1, 1]} : vector<8x384xf32> to vector<8x128xf32>
    %cst_20 = arith.constant 1.250000e-01 : f32
    %35 = vector.broadcast %cst_20 : f32 to vector<8x128xf32>
    %36 = arith.mulf %34, %35 : vector<8x128xf32>
    %37 = vector.extract_strided_slice %33 {offsets = [0, 128], sizes = [8, 128], strides = [1, 1]} : vector<8x384xf32> to vector<8x128xf32>
    %38 = vector.extract_strided_slice %33 {offsets = [0, 256], sizes = [8, 128], strides = [1, 1]} : vector<8x384xf32> to vector<8x128xf32>
    %39 = vector.extract_strided_slice %36 {offsets = [0, 0], sizes = [8, 64], strides = [1, 1]} : vector<8x128xf32> to vector<8x64xf32>
    %40 = arith.truncf %39 : vector<8x64xf32> to vector<8x64xbf16>
    %41 = vector.extract_strided_slice %37 {offsets = [0, 0], sizes = [8, 64], strides = [1, 1]} : vector<8x128xf32> to vector<8x64xf32>
    %42 = arith.truncf %41 : vector<8x64xf32> to vector<8x64xbf16>
    %43 = vector.extract_strided_slice %38 {offsets = [0, 0], sizes = [8, 64], strides = [1, 1]} : vector<8x128xf32> to vector<8x64xf32>
    %44 = arith.truncf %43 : vector<8x64xf32> to vector<8x64xbf16>
    "tpu.trace_start"() <{level = 10 : i32, message = "qd,kd->qk"}> : () -> ()
    %cst_21 = arith.constant dense<0.000000e+00> : vector<8x8xf32>
    %45 = tpu.matmul %40, %42, %cst_21 {dimension_numbers = #tpu.dot_dimension_numbers<[1], [1], [0], [0], [0, 0, 1, 0], [], []>} : vector<8x64xbf16>, vector<8x64xbf16>, vector<8x8xf32> -> vector<8x8xf32>
    "tpu.trace_stop"() : () -> ()
    %46 = vector.broadcast %25 : vector<1x8xf32> to vector<8x8xf32>
    %47 = arith.addf %45, %46 : vector<8x8xf32>
    %cst_22 = arith.constant dense<0xFF800000> : vector<8xf32>
    %48 = vector.multi_reduction <maximumf>, %47, %cst_22 [1] : vector<8x8xf32> to vector<8xf32>
    %49 = vector.shape_cast %48 : vector<8xf32> to vector<8x1xf32>
    %50 = vector.broadcast %49 : vector<8x1xf32> to vector<8x8xf32>
    %51 = arith.subf %47, %50 : vector<8x8xf32>
    %52 = math.exp %51 : vector<8x8xf32>
    %cst_23 = arith.constant dense<0.000000e+00> : vector<8xf32>
    %53 = vector.multi_reduction <add>, %52, %cst_23 [1] : vector<8x8xf32> to vector<8xf32>
    %54 = vector.shape_cast %53 : vector<8xf32> to vector<8x1xf32>
    %55 = tpu.reciprocal %54 {approx = true} : vector<8x1xf32> -> vector<8x1xf32>
    %56 = vector.broadcast %55 : vector<8x1xf32> to vector<8x8xf32>
    %57 = arith.mulf %52, %56 : vector<8x8xf32>
    %58 = arith.truncf %57 : vector<8x8xf32> to vector<8x8xbf16>
    %cst_24 = arith.constant dense<0.000000e+00> : vector<8x64xf32>
    %59 = tpu.matmul %58, %44, %cst_24 {dimension_numbers = #tpu.dot_dimension_numbers<[1], [0], [0], [1], [0, 0, 1, 1], [], []>} : vector<8x8xbf16>, vector<8x64xbf16>, vector<8x64xf32> -> vector<8x64xf32>
    %60 = vector.extract_strided_slice %36 {offsets = [0, 64], sizes = [8, 64], strides = [1, 1]} : vector<8x128xf32> to vector<8x64xf32>
    %61 = arith.truncf %60 : vector<8x64xf32> to vector<8x64xbf16>
    %62 = vector.extract_strided_slice %37 {offsets = [0, 64], sizes = [8, 64], strides = [1, 1]} : vector<8x128xf32> to vector<8x64xf32>
    %63 = arith.truncf %62 : vector<8x64xf32> to vector<8x64xbf16>
    %64 = vector.extract_strided_slice %38 {offsets = [0, 64], sizes = [8, 64], strides = [1, 1]} : vector<8x128xf32> to vector<8x64xf32>
    %65 = arith.truncf %64 : vector<8x64xf32> to vector<8x64xbf16>
    "tpu.trace_start"() <{level = 10 : i32, message = "qd,kd->qk"}> : () -> ()
    %cst_25 = arith.constant dense<0.000000e+00> : vector<8x8xf32>
    %66 = tpu.matmul %61, %63, %cst_25 {dimension_numbers = #tpu.dot_dimension_numbers<[1], [1], [0], [0], [0, 0, 1, 0], [], []>} : vector<8x64xbf16>, vector<8x64xbf16>, vector<8x8xf32> -> vector<8x8xf32>
    "tpu.trace_stop"() : () -> ()
    %67 = vector.broadcast %25 : vector<1x8xf32> to vector<8x8xf32>
    %68 = arith.addf %66, %67 : vector<8x8xf32>
    %cst_26 = arith.constant dense<0xFF800000> : vector<8xf32>
    %69 = vector.multi_reduction <maximumf>, %68, %cst_26 [1] : vector<8x8xf32> to vector<8xf32>
    %70 = vector.shape_cast %69 : vector<8xf32> to vector<8x1xf32>
    %71 = vector.broadcast %70 : vector<8x1xf32> to vector<8x8xf32>
    %72 = arith.subf %68, %71 : vector<8x8xf32>
    %73 = math.exp %72 : vector<8x8xf32>
    %cst_27 = arith.constant dense<0.000000e+00> : vector<8xf32>
    %74 = vector.multi_reduction <add>, %73, %cst_27 [1] : vector<8x8xf32> to vector<8xf32>
    %75 = vector.shape_cast %74 : vector<8xf32> to vector<8x1xf32>
    %76 = tpu.reciprocal %75 {approx = true} : vector<8x1xf32> -> vector<8x1xf32>
    %77 = vector.broadcast %76 : vector<8x1xf32> to vector<8x8xf32>
    %78 = arith.mulf %73, %77 : vector<8x8xf32>
    %79 = arith.truncf %78 : vector<8x8xf32> to vector<8x8xbf16>
    %cst_28 = arith.constant dense<0.000000e+00> : vector<8x64xf32>
    %80 = tpu.matmul %79, %65, %cst_28 {dimension_numbers = #tpu.dot_dimension_numbers<[1], [0], [0], [1], [0, 0, 1, 1], [], []>} : vector<8x8xbf16>, vector<8x64xbf16>, vector<8x64xf32> -> vector<8x64xf32>
    %81 = tpu.concatenate %59, %80 in 1 : vector<8x64xf32>, vector<8x64xf32> -> vector<8x128xf32>
    %82 = arith.truncf %81 : vector<8x128xf32> to vector<8x128xbf16>
    %c0_29 = arith.constant 0 : index
    %c0_30 = arith.constant 0 : index
    %c0_31 = arith.constant 0 : index
    %83 = vector.load %arg8[%c0_29, %c0_30, %c0_31] : memref<2x128x128xbf16, #tpu.memory_space<vmem>>, vector<1x128x128xbf16>
    %84 = vector.shape_cast %83 : vector<1x128x128xbf16> to vector<128x128xbf16>
    %cst_32 = arith.constant dense<0.000000e+00> : vector<8x128xf32>
    %85 = tpu.matmul %82, %84, %cst_32 {dimension_numbers = #tpu.dot_dimension_numbers<[1], [0], [0], [1], [0, 0, 1, 1], [], []>} : vector<8x128xbf16>, vector<128x128xbf16>, vector<8x128xf32> -> vector<8x128xf32>
    %c0_33 = arith.constant 0 : index
    %c0_34 = arith.constant 0 : index
    %c0_35 = arith.constant 0 : index
    %86 = vector.load %arg9[%c0_33, %c0_34, %c0_35] : memref<2x1x128xf32, #tpu.memory_space<vmem>>, vector<1x1x128xf32>
    %87 = vector.shape_cast %86 : vector<1x1x128xf32> to vector<1x128xf32>
    %88 = vector.broadcast %87 : vector<1x128xf32> to vector<8x128xf32>
    %89 = arith.addf %85, %88 : vector<8x128xf32>
    %90 = arith.addf %89, %23 : vector<8x128xf32>
    %c0_36 = arith.constant 0 : index
    %c0_37 = arith.constant 0 : index
    %c0_38 = arith.constant 0 : index
    %91 = vector.load %arg10[%c0_36, %c0_37, %c0_38] : memref<2x1x128xf32, #tpu.memory_space<vmem>>, vector<1x1x128xf32>
    %92 = vector.shape_cast %91 : vector<1x1x128xf32> to vector<1x128xf32>
    %c0_39 = arith.constant 0 : index
    %c0_40 = arith.constant 0 : index
    %c0_41 = arith.constant 0 : index
    %93 = vector.load %arg11[%c0_39, %c0_40, %c0_41] : memref<2x1x128xf32, #tpu.memory_space<vmem>>, vector<1x1x128xf32>
    %94 = vector.shape_cast %93 : vector<1x1x128xf32> to vector<1x128xf32>
    %cst_42 = arith.constant dense<0.000000e+00> : vector<8xf32>
    %95 = vector.multi_reduction <add>, %90, %cst_42 [1] : vector<8x128xf32> to vector<8xf32>
    %96 = vector.shape_cast %95 : vector<8xf32> to vector<8x1xf32>
    %cst_43 = arith.constant 1.280000e+02 : f32
    %97 = vector.broadcast %cst_43 : f32 to vector<8x1xf32>
    %98 = arith.divf %96, %97 : vector<8x1xf32>
    %99 = vector.broadcast %98 : vector<8x1xf32> to vector<8x128xf32>
    %100 = arith.subf %90, %99 : vector<8x128xf32>
    %101 = arith.mulf %100, %100 : vector<8x128xf32>
    %cst_44 = arith.constant dense<0.000000e+00> : vector<8xf32>
    %102 = vector.multi_reduction <add>, %101, %cst_44 [1] : vector<8x128xf32> to vector<8xf32>
    %103 = vector.shape_cast %102 : vector<8xf32> to vector<8x1xf32>
    %cst_45 = arith.constant 1.280000e+02 : f32
    %104 = vector.broadcast %cst_45 : f32 to vector<8x1xf32>
    %105 = arith.divf %103, %104 : vector<8x1xf32>
    %cst_46 = arith.constant 9.99999996E-13 : f32
    %106 = vector.broadcast %cst_46 : f32 to vector<8x1xf32>
    %107 = arith.addf %105, %106 : vector<8x1xf32>
    %108 = math.rsqrt %107 : vector<8x1xf32>
    %109 = vector.broadcast %108 : vector<8x1xf32> to vector<8x128xf32>
    %110 = arith.mulf %100, %109 : vector<8x128xf32>
    %111 = vector.broadcast %92 : vector<1x128xf32> to vector<8x128xf32>
    %112 = arith.mulf %110, %111 : vector<8x128xf32>
    %113 = vector.broadcast %94 : vector<1x128xf32> to vector<8x128xf32>
    %114 = arith.addf %112, %113 : vector<8x128xf32>
    %115 = arith.truncf %114 : vector<8x128xf32> to vector<8x128xbf16>
    %c0_47 = arith.constant 0 : index
    %c0_48 = arith.constant 0 : index
    %c0_49 = arith.constant 0 : index
    %116 = vector.load %arg12[%c0_47, %c0_48, %c0_49] : memref<2x128x256xbf16, #tpu.memory_space<vmem>>, vector<1x128x256xbf16>
    %117 = vector.shape_cast %116 : vector<1x128x256xbf16> to vector<128x256xbf16>
    %cst_50 = arith.constant dense<0.000000e+00> : vector<8x256xf32>
    %118 = tpu.matmul %115, %117, %cst_50 {dimension_numbers = #tpu.dot_dimension_numbers<[1], [0], [0], [1], [0, 0, 1, 1], [], []>} : vector<8x128xbf16>, vector<128x256xbf16>, vector<8x256xf32> -> vector<8x256xf32>
    %c0_51 = arith.constant 0 : index
    %c0_52 = arith.constant 0 : index
    %c0_53 = arith.constant 0 : index
    %119 = vector.load %arg13[%c0_51, %c0_52, %c0_53] : memref<2x1x256xf32, #tpu.memory_space<vmem>>, vector<1x1x256xf32>
    %120 = vector.shape_cast %119 : vector<1x1x256xf32> to vector<1x256xf32>
    %121 = vector.broadcast %120 : vector<1x256xf32> to vector<8x256xf32>
    %122 = arith.addf %118, %121 : vector<8x256xf32>
    %123 = arith.mulf %122, %122 : vector<8x256xf32>
    %124 = arith.mulf %122, %123 : vector<8x256xf32>
    %cst_54 = arith.constant 4.471500e-02 : f32
    %125 = vector.broadcast %cst_54 : f32 to vector<8x256xf32>
    %126 = arith.mulf %125, %124 : vector<8x256xf32>
    %127 = arith.addf %122, %126 : vector<8x256xf32>
    %cst_55 = arith.constant 0.797884583 : f32
    %128 = vector.broadcast %cst_55 : f32 to vector<8x256xf32>
    %129 = arith.mulf %128, %127 : vector<8x256xf32>
    %130 = math.tanh %129 : vector<8x256xf32>
    %cst_56 = arith.constant 1.000000e+00 : f32
    %131 = vector.broadcast %cst_56 : f32 to vector<8x256xf32>
    %132 = arith.addf %131, %130 : vector<8x256xf32>
    %cst_57 = arith.constant 5.000000e-01 : f32
    %133 = vector.broadcast %cst_57 : f32 to vector<8x256xf32>
    %134 = arith.mulf %133, %132 : vector<8x256xf32>
    %135 = arith.mulf %122, %134 : vector<8x256xf32>
    %136 = arith.truncf %135 : vector<8x256xf32> to vector<8x256xbf16>
    %c0_58 = arith.constant 0 : index
    %c0_59 = arith.constant 0 : index
    %c0_60 = arith.constant 0 : index
    %137 = vector.load %arg14[%c0_58, %c0_59, %c0_60] : memref<2x256x128xbf16, #tpu.memory_space<vmem>>, vector<1x256x128xbf16>
    %138 = vector.shape_cast %137 : vector<1x256x128xbf16> to vector<256x128xbf16>
    %cst_61 = arith.constant dense<0.000000e+00> : vector<8x128xf32>
    %139 = tpu.matmul %136, %138, %cst_61 {dimension_numbers = #tpu.dot_dimension_numbers<[1], [0], [0], [1], [0, 0, 1, 1], [], []>} : vector<8x256xbf16>, vector<256x128xbf16>, vector<8x128xf32> -> vector<8x128xf32>
    %c0_62 = arith.constant 0 : index
    %c0_63 = arith.constant 0 : index
    %c0_64 = arith.constant 0 : index
    %140 = vector.load %arg15[%c0_62, %c0_63, %c0_64] : memref<2x1x128xf32, #tpu.memory_space<vmem>>, vector<1x1x128xf32>
    %141 = vector.shape_cast %140 : vector<1x1x128xf32> to vector<1x128xf32>
    %142 = vector.broadcast %141 : vector<1x128xf32> to vector<8x128xf32>
    %143 = arith.addf %139, %142 : vector<8x128xf32>
    %144 = arith.addf %143, %114 : vector<8x128xf32>
    %c0_65 = arith.constant 0 : index
    %c0_66 = arith.constant 0 : index
    %c0_67 = arith.constant 0 : index
    %145 = vector.load %arg16[%c0_65, %c0_66, %c0_67] : memref<2x1x128xf32, #tpu.memory_space<vmem>>, vector<1x1x128xf32>
    %146 = vector.shape_cast %145 : vector<1x1x128xf32> to vector<1x128xf32>
    %c0_68 = arith.constant 0 : index
    %c0_69 = arith.constant 0 : index
    %c0_70 = arith.constant 0 : index
    %147 = vector.load %arg17[%c0_68, %c0_69, %c0_70] : memref<2x1x128xf32, #tpu.memory_space<vmem>>, vector<1x1x128xf32>
    %148 = vector.shape_cast %147 : vector<1x1x128xf32> to vector<1x128xf32>
    %cst_71 = arith.constant dense<0.000000e+00> : vector<8xf32>
    %149 = vector.multi_reduction <add>, %144, %cst_71 [1] : vector<8x128xf32> to vector<8xf32>
    %150 = vector.shape_cast %149 : vector<8xf32> to vector<8x1xf32>
    %cst_72 = arith.constant 1.280000e+02 : f32
    %151 = vector.broadcast %cst_72 : f32 to vector<8x1xf32>
    %152 = arith.divf %150, %151 : vector<8x1xf32>
    %153 = vector.broadcast %152 : vector<8x1xf32> to vector<8x128xf32>
    %154 = arith.subf %144, %153 : vector<8x128xf32>
    %155 = arith.mulf %154, %154 : vector<8x128xf32>
    %cst_73 = arith.constant dense<0.000000e+00> : vector<8xf32>
    %156 = vector.multi_reduction <add>, %155, %cst_73 [1] : vector<8x128xf32> to vector<8xf32>
    %157 = vector.shape_cast %156 : vector<8xf32> to vector<8x1xf32>
    %cst_74 = arith.constant 1.280000e+02 : f32
    %158 = vector.broadcast %cst_74 : f32 to vector<8x1xf32>
    %159 = arith.divf %157, %158 : vector<8x1xf32>
    %cst_75 = arith.constant 9.99999996E-13 : f32
    %160 = vector.broadcast %cst_75 : f32 to vector<8x1xf32>
    %161 = arith.addf %159, %160 : vector<8x1xf32>
    %162 = math.rsqrt %161 : vector<8x1xf32>
    %163 = vector.broadcast %162 : vector<8x1xf32> to vector<8x128xf32>
    %164 = arith.mulf %154, %163 : vector<8x128xf32>
    %165 = vector.broadcast %146 : vector<1x128xf32> to vector<8x128xf32>
    %166 = arith.mulf %164, %165 : vector<8x128xf32>
    %167 = vector.broadcast %148 : vector<1x128xf32> to vector<8x128xf32>
    %168 = arith.addf %166, %167 : vector<8x128xf32>
    %169 = arith.truncf %168 : vector<8x128xf32> to vector<8x128xbf16>
    %c1 = arith.constant 1 : index
    %c0_76 = arith.constant 0 : index
    %c0_77 = arith.constant 0 : index
    %170 = vector.load %arg6[%c1, %c0_76, %c0_77] : memref<2x128x384xbf16, #tpu.memory_space<vmem>>, vector<1x128x384xbf16>
    %171 = vector.shape_cast %170 : vector<1x128x384xbf16> to vector<128x384xbf16>
    %cst_78 = arith.constant dense<0.000000e+00> : vector<8x384xf32>
    %172 = tpu.matmul %169, %171, %cst_78 {dimension_numbers = #tpu.dot_dimension_numbers<[1], [0], [0], [1], [0, 0, 1, 1], [], []>} : vector<8x128xbf16>, vector<128x384xbf16>, vector<8x384xf32> -> vector<8x384xf32>
    %c1_79 = arith.constant 1 : index
    %c0_80 = arith.constant 0 : index
    %c0_81 = arith.constant 0 : index
    %173 = vector.load %arg7[%c1_79, %c0_80, %c0_81] : memref<2x1x384xf32, #tpu.memory_space<vmem>>, vector<1x1x384xf32>
    %174 = vector.shape_cast %173 : vector<1x1x384xf32> to vector<1x384xf32>
    %175 = vector.broadcast %174 : vector<1x384xf32> to vector<8x384xf32>
    %176 = arith.addf %172, %175 : vector<8x384xf32>
    %177 = vector.extract_strided_slice %176 {offsets = [0, 0], sizes = [8, 128], strides = [1, 1]} : vector<8x384xf32> to vector<8x128xf32>
    %cst_82 = arith.constant 1.250000e-01 : f32
    %178 = vector.broadcast %cst_82 : f32 to vector<8x128xf32>
    %179 = arith.mulf %177, %178 : vector<8x128xf32>
    %180 = vector.extract_strided_slice %176 {offsets = [0, 128], sizes = [8, 128], strides = [1, 1]} : vector<8x384xf32> to vector<8x128xf32>
    %181 = vector.extract_strided_slice %176 {offsets = [0, 256], sizes = [8, 128], strides = [1, 1]} : vector<8x384xf32> to vector<8x128xf32>
    %182 = vector.extract_strided_slice %179 {offsets = [0, 0], sizes = [8, 64], strides = [1, 1]} : vector<8x128xf32> to vector<8x64xf32>
    %183 = arith.truncf %182 : vector<8x64xf32> to vector<8x64xbf16>
    %184 = vector.extract_strided_slice %180 {offsets = [0, 0], sizes = [8, 64], strides = [1, 1]} : vector<8x128xf32> to vector<8x64xf32>
    %185 = arith.truncf %184 : vector<8x64xf32> to vector<8x64xbf16>
    %186 = vector.extract_strided_slice %181 {offsets = [0, 0], sizes = [8, 64], strides = [1, 1]} : vector<8x128xf32> to vector<8x64xf32>
    %187 = arith.truncf %186 : vector<8x64xf32> to vector<8x64xbf16>
    "tpu.trace_start"() <{level = 10 : i32, message = "qd,kd->qk"}> : () -> ()
    %cst_83 = arith.constant dense<0.000000e+00> : vector<8x8xf32>
    %188 = tpu.matmul %183, %185, %cst_83 {dimension_numbers = #tpu.dot_dimension_numbers<[1], [1], [0], [0], [0, 0, 1, 0], [], []>} : vector<8x64xbf16>, vector<8x64xbf16>, vector<8x8xf32> -> vector<8x8xf32>
    "tpu.trace_stop"() : () -> ()
    %189 = vector.broadcast %25 : vector<1x8xf32> to vector<8x8xf32>
    %190 = arith.addf %188, %189 : vector<8x8xf32>
    %cst_84 = arith.constant dense<0xFF800000> : vector<8xf32>
    %191 = vector.multi_reduction <maximumf>, %190, %cst_84 [1] : vector<8x8xf32> to vector<8xf32>
    %192 = vector.shape_cast %191 : vector<8xf32> to vector<8x1xf32>
    %193 = vector.broadcast %192 : vector<8x1xf32> to vector<8x8xf32>
    %194 = arith.subf %190, %193 : vector<8x8xf32>
    %195 = math.exp %194 : vector<8x8xf32>
    %cst_85 = arith.constant dense<0.000000e+00> : vector<8xf32>
    %196 = vector.multi_reduction <add>, %195, %cst_85 [1] : vector<8x8xf32> to vector<8xf32>
    %197 = vector.shape_cast %196 : vector<8xf32> to vector<8x1xf32>
    %198 = tpu.reciprocal %197 {approx = true} : vector<8x1xf32> -> vector<8x1xf32>
    %199 = vector.broadcast %198 : vector<8x1xf32> to vector<8x8xf32>
    %200 = arith.mulf %195, %199 : vector<8x8xf32>
    %201 = arith.truncf %200 : vector<8x8xf32> to vector<8x8xbf16>
    %cst_86 = arith.constant dense<0.000000e+00> : vector<8x64xf32>
    %202 = tpu.matmul %201, %187, %cst_86 {dimension_numbers = #tpu.dot_dimension_numbers<[1], [0], [0], [1], [0, 0, 1, 1], [], []>} : vector<8x8xbf16>, vector<8x64xbf16>, vector<8x64xf32> -> vector<8x64xf32>
    %203 = vector.extract_strided_slice %179 {offsets = [0, 64], sizes = [8, 64], strides = [1, 1]} : vector<8x128xf32> to vector<8x64xf32>
    %204 = arith.truncf %203 : vector<8x64xf32> to vector<8x64xbf16>
    %205 = vector.extract_strided_slice %180 {offsets = [0, 64], sizes = [8, 64], strides = [1, 1]} : vector<8x128xf32> to vector<8x64xf32>
    %206 = arith.truncf %205 : vector<8x64xf32> to vector<8x64xbf16>
    %207 = vector.extract_strided_slice %181 {offsets = [0, 64], sizes = [8, 64], strides = [1, 1]} : vector<8x128xf32> to vector<8x64xf32>
    %208 = arith.truncf %207 : vector<8x64xf32> to vector<8x64xbf16>
    "tpu.trace_start"() <{level = 10 : i32, message = "qd,kd->qk"}> : () -> ()
    %cst_87 = arith.constant dense<0.000000e+00> : vector<8x8xf32>
    %209 = tpu.matmul %204, %206, %cst_87 {dimension_numbers = #tpu.dot_dimension_numbers<[1], [1], [0], [0], [0, 0, 1, 0], [], []>} : vector<8x64xbf16>, vector<8x64xbf16>, vector<8x8xf32> -> vector<8x8xf32>
    "tpu.trace_stop"() : () -> ()
    %210 = vector.broadcast %25 : vector<1x8xf32> to vector<8x8xf32>
    %211 = arith.addf %209, %210 : vector<8x8xf32>
    %cst_88 = arith.constant dense<0xFF800000> : vector<8xf32>
    %212 = vector.multi_reduction <maximumf>, %211, %cst_88 [1] : vector<8x8xf32> to vector<8xf32>
    %213 = vector.shape_cast %212 : vector<8xf32> to vector<8x1xf32>
    %214 = vector.broadcast %213 : vector<8x1xf32> to vector<8x8xf32>
    %215 = arith.subf %211, %214 : vector<8x8xf32>
    %216 = math.exp %215 : vector<8x8xf32>
    %cst_89 = arith.constant dense<0.000000e+00> : vector<8xf32>
    %217 = vector.multi_reduction <add>, %216, %cst_89 [1] : vector<8x8xf32> to vector<8xf32>
    %218 = vector.shape_cast %217 : vector<8xf32> to vector<8x1xf32>
    %219 = tpu.reciprocal %218 {approx = true} : vector<8x1xf32> -> vector<8x1xf32>
    %220 = vector.broadcast %219 : vector<8x1xf32> to vector<8x8xf32>
    %221 = arith.mulf %216, %220 : vector<8x8xf32>
    %222 = arith.truncf %221 : vector<8x8xf32> to vector<8x8xbf16>
    %cst_90 = arith.constant dense<0.000000e+00> : vector<8x64xf32>
    %223 = tpu.matmul %222, %208, %cst_90 {dimension_numbers = #tpu.dot_dimension_numbers<[1], [0], [0], [1], [0, 0, 1, 1], [], []>} : vector<8x8xbf16>, vector<8x64xbf16>, vector<8x64xf32> -> vector<8x64xf32>
    %224 = tpu.concatenate %202, %223 in 1 : vector<8x64xf32>, vector<8x64xf32> -> vector<8x128xf32>
    %225 = arith.truncf %224 : vector<8x128xf32> to vector<8x128xbf16>
    %c1_91 = arith.constant 1 : index
    %c0_92 = arith.constant 0 : index
    %c0_93 = arith.constant 0 : index
    %226 = vector.load %arg8[%c1_91, %c0_92, %c0_93] : memref<2x128x128xbf16, #tpu.memory_space<vmem>>, vector<1x128x128xbf16>
    %227 = vector.shape_cast %226 : vector<1x128x128xbf16> to vector<128x128xbf16>
    %cst_94 = arith.constant dense<0.000000e+00> : vector<8x128xf32>
    %228 = tpu.matmul %225, %227, %cst_94 {dimension_numbers = #tpu.dot_dimension_numbers<[1], [0], [0], [1], [0, 0, 1, 1], [], []>} : vector<8x128xbf16>, vector<128x128xbf16>, vector<8x128xf32> -> vector<8x128xf32>
    %c1_95 = arith.constant 1 : index
    %c0_96 = arith.constant 0 : index
    %c0_97 = arith.constant 0 : index
    %229 = vector.load %arg9[%c1_95, %c0_96, %c0_97] : memref<2x1x128xf32, #tpu.memory_space<vmem>>, vector<1x1x128xf32>
    %230 = vector.shape_cast %229 : vector<1x1x128xf32> to vector<1x128xf32>
    %231 = vector.broadcast %230 : vector<1x128xf32> to vector<8x128xf32>
    %232 = arith.addf %228, %231 : vector<8x128xf32>
    %233 = arith.addf %232, %168 : vector<8x128xf32>
    %c1_98 = arith.constant 1 : index
    %c0_99 = arith.constant 0 : index
    %c0_100 = arith.constant 0 : index
    %234 = vector.load %arg10[%c1_98, %c0_99, %c0_100] : memref<2x1x128xf32, #tpu.memory_space<vmem>>, vector<1x1x128xf32>
    %235 = vector.shape_cast %234 : vector<1x1x128xf32> to vector<1x128xf32>
    %c1_101 = arith.constant 1 : index
    %c0_102 = arith.constant 0 : index
    %c0_103 = arith.constant 0 : index
    %236 = vector.load %arg11[%c1_101, %c0_102, %c0_103] : memref<2x1x128xf32, #tpu.memory_space<vmem>>, vector<1x1x128xf32>
    %237 = vector.shape_cast %236 : vector<1x1x128xf32> to vector<1x128xf32>
    %cst_104 = arith.constant dense<0.000000e+00> : vector<8xf32>
    %238 = vector.multi_reduction <add>, %233, %cst_104 [1] : vector<8x128xf32> to vector<8xf32>
    %239 = vector.shape_cast %238 : vector<8xf32> to vector<8x1xf32>
    %cst_105 = arith.constant 1.280000e+02 : f32
    %240 = vector.broadcast %cst_105 : f32 to vector<8x1xf32>
    %241 = arith.divf %239, %240 : vector<8x1xf32>
    %242 = vector.broadcast %241 : vector<8x1xf32> to vector<8x128xf32>
    %243 = arith.subf %233, %242 : vector<8x128xf32>
    %244 = arith.mulf %243, %243 : vector<8x128xf32>
    %cst_106 = arith.constant dense<0.000000e+00> : vector<8xf32>
    %245 = vector.multi_reduction <add>, %244, %cst_106 [1] : vector<8x128xf32> to vector<8xf32>
    %246 = vector.shape_cast %245 : vector<8xf32> to vector<8x1xf32>
    %cst_107 = arith.constant 1.280000e+02 : f32
    %247 = vector.broadcast %cst_107 : f32 to vector<8x1xf32>
    %248 = arith.divf %246, %247 : vector<8x1xf32>
    %cst_108 = arith.constant 9.99999996E-13 : f32
    %249 = vector.broadcast %cst_108 : f32 to vector<8x1xf32>
    %250 = arith.addf %248, %249 : vector<8x1xf32>
    %251 = math.rsqrt %250 : vector<8x1xf32>
    %252 = vector.broadcast %251 : vector<8x1xf32> to vector<8x128xf32>
    %253 = arith.mulf %243, %252 : vector<8x128xf32>
    %254 = vector.broadcast %235 : vector<1x128xf32> to vector<8x128xf32>
    %255 = arith.mulf %253, %254 : vector<8x128xf32>
    %256 = vector.broadcast %237 : vector<1x128xf32> to vector<8x128xf32>
    %257 = arith.addf %255, %256 : vector<8x128xf32>
    %258 = arith.truncf %257 : vector<8x128xf32> to vector<8x128xbf16>
    %c1_109 = arith.constant 1 : index
    %c0_110 = arith.constant 0 : index
    %c0_111 = arith.constant 0 : index
    %259 = vector.load %arg12[%c1_109, %c0_110, %c0_111] : memref<2x128x256xbf16, #tpu.memory_space<vmem>>, vector<1x128x256xbf16>
    %260 = vector.shape_cast %259 : vector<1x128x256xbf16> to vector<128x256xbf16>
    %cst_112 = arith.constant dense<0.000000e+00> : vector<8x256xf32>
    %261 = tpu.matmul %258, %260, %cst_112 {dimension_numbers = #tpu.dot_dimension_numbers<[1], [0], [0], [1], [0, 0, 1, 1], [], []>} : vector<8x128xbf16>, vector<128x256xbf16>, vector<8x256xf32> -> vector<8x256xf32>
    %c1_113 = arith.constant 1 : index
    %c0_114 = arith.constant 0 : index
    %c0_115 = arith.constant 0 : index
    %262 = vector.load %arg13[%c1_113, %c0_114, %c0_115] : memref<2x1x256xf32, #tpu.memory_space<vmem>>, vector<1x1x256xf32>
    %263 = vector.shape_cast %262 : vector<1x1x256xf32> to vector<1x256xf32>
    %264 = vector.broadcast %263 : vector<1x256xf32> to vector<8x256xf32>
    %265 = arith.addf %261, %264 : vector<8x256xf32>
    %266 = arith.mulf %265, %265 : vector<8x256xf32>
    %267 = arith.mulf %265, %266 : vector<8x256xf32>
    %cst_116 = arith.constant 4.471500e-02 : f32
    %268 = vector.broadcast %cst_116 : f32 to vector<8x256xf32>
    %269 = arith.mulf %268, %267 : vector<8x256xf32>
    %270 = arith.addf %265, %269 : vector<8x256xf32>
    %cst_117 = arith.constant 0.797884583 : f32
    %271 = vector.broadcast %cst_117 : f32 to vector<8x256xf32>
    %272 = arith.mulf %271, %270 : vector<8x256xf32>
    %273 = math.tanh %272 : vector<8x256xf32>
    %cst_118 = arith.constant 1.000000e+00 : f32
    %274 = vector.broadcast %cst_118 : f32 to vector<8x256xf32>
    %275 = arith.addf %274, %273 : vector<8x256xf32>
    %cst_119 = arith.constant 5.000000e-01 : f32
    %276 = vector.broadcast %cst_119 : f32 to vector<8x256xf32>
    %277 = arith.mulf %276, %275 : vector<8x256xf32>
    %278 = arith.mulf %265, %277 : vector<8x256xf32>
    %279 = arith.truncf %278 : vector<8x256xf32> to vector<8x256xbf16>
    %c1_120 = arith.constant 1 : index
    %c0_121 = arith.constant 0 : index
    %c0_122 = arith.constant 0 : index
    %280 = vector.load %arg14[%c1_120, %c0_121, %c0_122] : memref<2x256x128xbf16, #tpu.memory_space<vmem>>, vector<1x256x128xbf16>
    %281 = vector.shape_cast %280 : vector<1x256x128xbf16> to vector<256x128xbf16>
    %cst_123 = arith.constant dense<0.000000e+00> : vector<8x128xf32>
    %282 = tpu.matmul %279, %281, %cst_123 {dimension_numbers = #tpu.dot_dimension_numbers<[1], [0], [0], [1], [0, 0, 1, 1], [], []>} : vector<8x256xbf16>, vector<256x128xbf16>, vector<8x128xf32> -> vector<8x128xf32>
    %c1_124 = arith.constant 1 : index
    %c0_125 = arith.constant 0 : index
    %c0_126 = arith.constant 0 : index
    %283 = vector.load %arg15[%c1_124, %c0_125, %c0_126] : memref<2x1x128xf32, #tpu.memory_space<vmem>>, vector<1x1x128xf32>
    %284 = vector.shape_cast %283 : vector<1x1x128xf32> to vector<1x128xf32>
    %285 = vector.broadcast %284 : vector<1x128xf32> to vector<8x128xf32>
    %286 = arith.addf %282, %285 : vector<8x128xf32>
    %287 = arith.addf %286, %257 : vector<8x128xf32>
    %c1_127 = arith.constant 1 : index
    %c0_128 = arith.constant 0 : index
    %c0_129 = arith.constant 0 : index
    %288 = vector.load %arg16[%c1_127, %c0_128, %c0_129] : memref<2x1x128xf32, #tpu.memory_space<vmem>>, vector<1x1x128xf32>
    %289 = vector.shape_cast %288 : vector<1x1x128xf32> to vector<1x128xf32>
    %c1_130 = arith.constant 1 : index
    %c0_131 = arith.constant 0 : index
    %c0_132 = arith.constant 0 : index
    %290 = vector.load %arg17[%c1_130, %c0_131, %c0_132] : memref<2x1x128xf32, #tpu.memory_space<vmem>>, vector<1x1x128xf32>
    %291 = vector.shape_cast %290 : vector<1x1x128xf32> to vector<1x128xf32>
    %cst_133 = arith.constant dense<0.000000e+00> : vector<8xf32>
    %292 = vector.multi_reduction <add>, %287, %cst_133 [1] : vector<8x128xf32> to vector<8xf32>
    %293 = vector.shape_cast %292 : vector<8xf32> to vector<8x1xf32>
    %cst_134 = arith.constant 1.280000e+02 : f32
    %294 = vector.broadcast %cst_134 : f32 to vector<8x1xf32>
    %295 = arith.divf %293, %294 : vector<8x1xf32>
    %296 = vector.broadcast %295 : vector<8x1xf32> to vector<8x128xf32>
    %297 = arith.subf %287, %296 : vector<8x128xf32>
    %298 = arith.mulf %297, %297 : vector<8x128xf32>
    %cst_135 = arith.constant dense<0.000000e+00> : vector<8xf32>
    %299 = vector.multi_reduction <add>, %298, %cst_135 [1] : vector<8x128xf32> to vector<8xf32>
    %300 = vector.shape_cast %299 : vector<8xf32> to vector<8x1xf32>
    %cst_136 = arith.constant 1.280000e+02 : f32
    %301 = vector.broadcast %cst_136 : f32 to vector<8x1xf32>
    %302 = arith.divf %300, %301 : vector<8x1xf32>
    %cst_137 = arith.constant 9.99999996E-13 : f32
    %303 = vector.broadcast %cst_137 : f32 to vector<8x1xf32>
    %304 = arith.addf %302, %303 : vector<8x1xf32>
    %305 = math.rsqrt %304 : vector<8x1xf32>
    %306 = vector.broadcast %305 : vector<8x1xf32> to vector<8x128xf32>
    %307 = arith.mulf %297, %306 : vector<8x128xf32>
    %308 = vector.broadcast %289 : vector<1x128xf32> to vector<8x128xf32>
    %309 = arith.mulf %307, %308 : vector<8x128xf32>
    %310 = vector.broadcast %291 : vector<1x128xf32> to vector<8x128xf32>
    %311 = arith.addf %309, %310 : vector<8x128xf32>
    %c0_138 = arith.constant 0 : index
    %c0_139 = arith.constant 0 : index
    %c0_140 = arith.constant 0 : index
    %312 = vector.load %arg3[%c0_138, %c0_139, %c0_140] : memref<1x8x1xf32, #tpu.memory_space<vmem>>, vector<1x8x1xf32>
    %313 = vector.shape_cast %312 : vector<1x8x1xf32> to vector<8x1xf32>
    %314 = vector.broadcast %313 : vector<8x1xf32> to vector<8x128xf32>
    %315 = arith.mulf %311, %314 : vector<8x128xf32>
    %cst_141 = arith.constant dense<0.000000e+00> : vector<128xf32>
    %316 = vector.multi_reduction <add>, %315, %cst_141 [0] : vector<8x128xf32> to vector<128xf32>
    %317 = vector.shape_cast %316 : vector<128xf32> to vector<1x128xf32>
    %cst_142 = arith.constant dense<0.000000e+00> : vector<1xf32>
    %318 = vector.multi_reduction <add>, %313, %cst_142 [0] : vector<8x1xf32> to vector<1xf32>
    %319 = vector.shape_cast %318 : vector<1xf32> to vector<1x1xf32>
    %cst_143 = arith.constant 9.99999971E-10 : f32
    %320 = vector.broadcast %cst_143 : f32 to vector<1x1xf32>
    %321 = arith.maximumf %319, %320 : vector<1x1xf32>
    %322 = vector.broadcast %321 : vector<1x1xf32> to vector<1x128xf32>
    %323 = arith.divf %317, %322 : vector<1x128xf32>
    %324 = arith.mulf %323, %323 : vector<1x128xf32>
    %cst_144 = arith.constant dense<0.000000e+00> : vector<1xf32>
    %325 = vector.multi_reduction <add>, %324, %cst_144 [1] : vector<1x128xf32> to vector<1xf32>
    %326 = vector.shape_cast %325 : vector<1xf32> to vector<1x1xf32>
    %327 = math.sqrt %326 : vector<1x1xf32>
    %cst_145 = arith.constant 9.99999996E-13 : f32
    %328 = vector.broadcast %cst_145 : f32 to vector<1x1xf32>
    %329 = arith.maximumf %327, %328 : vector<1x1xf32>
    %330 = vector.broadcast %329 : vector<1x1xf32> to vector<1x128xf32>
    %331 = arith.divf %323, %330 : vector<1x128xf32>
    %c0_146 = arith.constant 0 : index
    %c0_147 = arith.constant 0 : index
    %c0_148 = arith.constant 0 : index
    %332 = vector.load %arg18[%c0_146, %c0_147, %c0_148] : memref<1x1x128xf32, #tpu.memory_space<vmem>>, vector<1x1x128xf32>
    %333 = vector.shape_cast %332 : vector<1x1x128xf32> to vector<1x128xf32>
    %334 = vector.shape_cast %331 : vector<1x128xf32> to vector<1x1x128xf32>
    tpu.vector_store %arg18[%c0_146, %c0_147, %c0_148], %334 {strides = array<i32>} : memref<1x1x128xf32, #tpu.memory_space<vmem>>, vector<1x1x128xf32>,
    return
  }
  func.func @transform_0(%arg0: i32) -> (i32, i32, i32) {
    %c0_i32 = arith.constant 0 : i32
    %c0_i32_0 = arith.constant 0 : i32
    %c0_i32_1 = arith.constant 0 : i32
    return %arg0, %c0_i32, %c0_i32_0 : i32, i32, i32
  }
  func.func @transform_1(%arg0: i32) -> (i32, i32, i32) {
    %c0_i32 = arith.constant 0 : i32
    %c0_i32_0 = arith.constant 0 : i32
    %c0_i32_1 = arith.constant 0 : i32
    return %arg0, %c0_i32, %c0_i32_0 : i32, i32, i32
  }
  func.func @transform_2(%arg0: i32) -> (i32, i32, i32) {
    %c0_i32 = arith.constant 0 : i32
    %c0_i32_0 = arith.constant 0 : i32
    %c0_i32_1 = arith.constant 0 : i32
    return %arg0, %c0_i32, %c0_i32_0 : i32, i32, i32
  }
  func.func @transform_3(%arg0: i32) -> (i32, i32) {
    %c0_i32 = arith.constant 0 : i32
    %c0_i32_0 = arith.constant 0 : i32
    %c0_i32_1 = arith.constant 0 : i32
    return %c0_i32, %c0_i32_0 : i32, i32
  }
  func.func @transform_4(%arg0: i32) -> (i32, i32) {
    %c0_i32 = arith.constant 0 : i32
    %c0_i32_0 = arith.constant 0 : i32
    %c0_i32_1 = arith.constant 0 : i32
    return %c0_i32, %c0_i32_0 : i32, i32
  }
  func.func @transform_5(%arg0: i32) -> (i32, i32, i32) {
    %c0_i32 = arith.constant 0 : i32
    %c0_i32_0 = arith.constant 0 : i32
    %c0_i32_1 = arith.constant 0 : i32
    %c0_i32_2 = arith.constant 0 : i32
    return %c0_i32, %c0_i32_0, %c0_i32_1 : i32, i32, i32
  }
  func.func @transform_6(%arg0: i32) -> (i32, i32, i32) {
    %c0_i32 = arith.constant 0 : i32
    %c0_i32_0 = arith.constant 0 : i32
    %c0_i32_1 = arith.constant 0 : i32
    %c0_i32_2 = arith.constant 0 : i32
    return %c0_i32, %c0_i32_0, %c0_i32_1 : i32, i32, i32
  }
  func.func @transform_7(%arg0: i32) -> (i32, i32, i32) {
    %c0_i32 = arith.constant 0 : i32
    %c0_i32_0 = arith.constant 0 : i32
    %c0_i32_1 = arith.constant 0 : i32
    %c0_i32_2 = arith.constant 0 : i32
    return %c0_i32, %c0_i32_0, %c0_i32_1 : i32, i32, i32
  }
  func.func @transform_8(%arg0: i32) -> (i32, i32, i32) {
    %c0_i32 = arith.constant 0 : i32
    %c0_i32_0 = arith.constant 0 : i32
    %c0_i32_1 = arith.constant 0 : i32
    %c0_i32_2 = arith.constant 0 : i32
    return %c0_i32, %c0_i32_0, %c0_i32_1 : i32, i32, i32
  }
  func.func @transform_9(%arg0: i32) -> (i32, i32, i32) {
    %c0_i32 = arith.constant 0 : i32
    %c0_i32_0 = arith.constant 0 : i32
    %c0_i32_1 = arith.constant 0 : i32
    %c0_i32_2 = arith.constant 0 : i32
    return %c0_i32, %c0_i32_0, %c0_i32_1 : i32, i32, i32
  }
  func.func @transform_10(%arg0: i32) -> (i32, i32, i32) {
    %c0_i32 = arith.constant 0 : i32
    %c0_i32_0 = arith.constant 0 : i32
    %c0_i32_1 = arith.constant 0 : i32
    %c0_i32_2 = arith.constant 0 : i32
    return %c0_i32, %c0_i32_0, %c0_i32_1 : i32, i32, i32
  }
  func.func @transform_11(%arg0: i32) -> (i32, i32, i32) {
    %c0_i32 = arith.constant 0 : i32
    %c0_i32_0 = arith.constant 0 : i32
    %c0_i32_1 = arith.constant 0 : i32
    %c0_i32_2 = arith.constant 0 : i32
    return %c0_i32, %c0_i32_0, %c0_i32_1 : i32, i32, i32
  }
  func.func @transform_12(%arg0: i32) -> (i32, i32, i32) {
    %c0_i32 = arith.constant 0 : i32
    %c0_i32_0 = arith.constant 0 : i32
    %c0_i32_1 = arith.constant 0 : i32
    %c0_i32_2 = arith.constant 0 : i32
    return %c0_i32, %c0_i32_0, %c0_i32_1 : i32, i32, i32
  }
  func.func @transform_13(%arg0: i32) -> (i32, i32, i32) {
    %c0_i32 = arith.constant 0 : i32
    %c0_i32_0 = arith.constant 0 : i32
    %c0_i32_1 = arith.constant 0 : i32
    %c0_i32_2 = arith.constant 0 : i32
    return %c0_i32, %c0_i32_0, %c0_i32_1 : i32, i32, i32
  }
  func.func @transform_14(%arg0: i32) -> (i32, i32, i32) {
    %c0_i32 = arith.constant 0 : i32
    %c0_i32_0 = arith.constant 0 : i32
    %c0_i32_1 = arith.constant 0 : i32
    %c0_i32_2 = arith.constant 0 : i32
    return %c0_i32, %c0_i32_0, %c0_i32_1 : i32, i32, i32
  }
  func.func @transform_15(%arg0: i32) -> (i32, i32, i32) {
    %c0_i32 = arith.constant 0 : i32
    %c0_i32_0 = arith.constant 0 : i32
    %c0_i32_1 = arith.constant 0 : i32
    %c0_i32_2 = arith.constant 0 : i32
    return %c0_i32, %c0_i32_0, %c0_i32_1 : i32, i32, i32
  }
  func.func @transform_16(%arg0: i32) -> (i32, i32, i32) {
    %c0_i32 = arith.constant 0 : i32
    %c0_i32_0 = arith.constant 0 : i32
    %c0_i32_1 = arith.constant 0 : i32
    %c0_i32_2 = arith.constant 0 : i32
    return %c0_i32, %c0_i32_0, %c0_i32_1 : i32, i32, i32
  }
  func.func @transform_17(%arg0: i32) -> (i32, i32, i32) {
    %c0_i32 = arith.constant 0 : i32
    %c0_i32_0 = arith.constant 0 : i32
    %c0_i32_1 = arith.constant 0 : i32
    return %arg0, %c0_i32, %c0_i32_0 : i32, i32, i32
  }
}

</mosaic_0001>

<bundles_post_ra>
// kernel: encoder_forward.1
= control target key start
LH: loop header
LB: loop body
LE: loop exit
PB: predicated region body
PF: predicated region fallthrough
CT: control target
= control target key end

     0   :  { %s4218_s0 = inlined_call_operand.vmem [shape: f32[2,8,128], index: 0, kind: input, shape index: {}]   ;;  %s4219_s1 = inlined_call_operand.vmem [shape: f32[2,1,8], index: 1, kind: input, shape index: {}]   ;;  %s4220_s2 = inlined_call_operand.vmem [shape: f32[2,8,1], index: 2, kind: input, shape index: {}]   ;;  %s4221_s3 = inlined_call_operand.vmem [shape: f32[1,128], index: 3, kind: input, shape index: {}]   ;;  %s4222_s4 = inlined_call_operand.vmem [shape: f32[1,128], index: 4, kind: input, shape index: {}]   ;;  %s4223_s5 = inlined_call_operand.hbm [shape: bf16[2,128,384], index: 5, kind: input, shape index: {}]   ;;  %s4224_s6 = inlined_call_operand.vmem [shape: f32[2,1,384], index: 6, kind: input, shape index: {}]   ;;  %s4225_s7 = inlined_call_operand.vmem [shape: bf16[2,128,128], index: 7, kind: input, shape index: {}]   ;;  %s4226_s8 = inlined_call_operand.vmem [shape: f32[2,1,128], index: 8, kind: input, shape index: {}]   ;;  %s4227_s9 = inlined_call_operand.vmem [shape: f32[2,1,128], index: 9, kind: input, shape index: {}]   ;;  %s4228_s10 = inlined_call_operand.vmem [shape: f32[2,1,128], index: 10, kind: input, shape index: {}]   ;;  %s4229_s11 = inlined_call_operand.vmem [shape: bf16[2,128,256], index: 11, kind: input, shape index: {}]   ;;  %s4230_s12 = inlined_call_operand.vmem [shape: f32[2,1,256], index: 12, kind: input, shape index: {}]   ;;  %s4231_s13 = inlined_call_operand.hbm [shape: bf16[2,256,128], index: 13, kind: input, shape index: {}]   ;;  %s4232_s14 = inlined_call_operand.vmem [shape: f32[2,1,128], index: 14, kind: input, shape index: {}]   ;;  %s4233_s15 = inlined_call_operand.vmem [shape: f32[2,1,128], index: 15, kind: input, shape index: {}]   ;;  %s4234_s16 = inlined_call_operand.vmem [shape: f32[2,1,128], index: 16, kind: input, shape index: {}]   ;;  %s4235_s17 = inlined_call_operand.hbm [shape: f32[2,1,128], index: 17, kind: output, shape index: {}]  }
   0x1   :  { %4244 = sst [smem:[#allocation17_spill]] %s4218_s0 }
   0x2   :  { %4245 = sst [smem:[#allocation18_spill]] %s4219_s1 }
   0x3   :  { %4246 = sst [smem:[#allocation19_spill]] %s4235_s17 }
   0x4   :  { %22 = vsyncpa [#allocation3], 0 }
   0x5   :  { %23 = vsyncpa [#allocation6], 0 }
   0x6   :  { %24 = vsyncpa [#allocation4], 0 }
   0x7   :  { %26 = vsyncpa [#allocation4 + $0x1], 0  ;;  %s3727_s24 = smov 0   ;;  %s3729_s25 = smov 0  }
   0x8   :  { %s3731_s26 = smov 0   ;;  %s3733_s27 = smov 0  }
   0x9 LB: > { %4247 = sst [smem:[#allocation11_spill]] %s3612_s24  ;;  %s3748_s28 = sadd.s32 4294967295, %s3624_s27   ;;  %s3624_s27 = sphi %s3733_s27, %s4268_s27   ;;  %s3620_s26 = sphi %s3731_s26, %s4270_s26   ;;  %s3616_s25 = sphi %s3729_s25, %s4272_s25   ;;  %s3612_s24 = sphi %s3727_s24, %s4271_s24  }
   0xa   : > { %4248 = sst [smem:[#allocation12_spill]] %s3620_s26  ;;  %s2806_s29 = sadd.s32 4294967294, %s3624_s27  }
   0xb   : > { %4249 = sst [smem:[#allocation13_spill]] %s3624_s27  ;;  %s3752_s0 = sadd.s32 1, %s3624_s27  }
   0xc   : > { %4250 = sst [smem:[#allocation14_spill]] %s3752_s0  ;;  %s411_s30 = sadd.s32 1, %s3620_s26 }
   0xd   : > { %s408_s18 = ssub.s32 %s3624_s27, %s3752_s0  ;;  %p421_p0 = scmp.ne.s32.totalorder %s3620_s26, %s3616_s25 }
   0xe   : > { %p409_p1 = scmp.eq.s32.totalorder %s408_s18, 0  ;;  %p422_p2 = scmp.eq.s32.totalorder %s3748_s28, 1 }
   0xf   : > { %p427_p3 = scmp.ne.s32.totalorder %s3616_s25, %s3612_s24  ;;  %p428_p4 = scmp.eq.s32.totalorder %s2806_s29, 1 }
  0x10   : > { %s3763_s19 = scalar_select %p409_p1, %s3620_s26, %s411_s30  }
  0x11   : > { %p3765_p5 = por %p422_p2, %p421_p0  ;;  %p3769_p6 = por %p428_p4, %p427_p3 }
  0x12   : > { %4251 = sst [smem:[#allocation15_spill]] %s3763_s19  ;;  %p2807_p7 = scmp.ge.s32.totalorder %s3624_s27, 1 }
  0x13   : > { %s4253_s20 = scalar_select %p3769_p6, 1, 0 }
  0x14   : > { %p435_p8 = scmp.lt.s32.totalorder %s3624_s27, 3  ;;  %p4240_p9 = scmp.eq.s32.totalorder %s3748_s28, 0 }
  0x15   : > { %4254 = sst [smem:[#allocation16_spill]] %s4253_s20  ;;  %s3626_s22 = smov [#allocation2]  }
  0x16   : > { %p3776_p10 = pnand %p2807_p7, %p435_p8  ;;  %s453_s23 = sshll.u32 %s3626_s22, 4  ;;  %s454_s23 = int_to_ptr.vmem [resolvable:$true] %s453_s23 }
  0x17   : > { %s3627_s30 = smov [#allocation5]   ;;  %s3515_s19 = scalar_lea.vmem %s454_s23, 6144 }
  0x18   : > { %p3244_p11 = pneg %p3776_p10  ;;  %s487_s18 = sshll.u32 %s3627_s30, 4  ;;  %s488_s18 = int_to_ptr.vmem [resolvable:$true] %s487_s18 }
  0x19   : > { %p3516_p0 = scmp.ne.s32.totalorder %s454_s23, %s3515_s19  ;;  %p3523_p3 = scmp.lt.s32.totalorder %s454_s23, %s454_s23 }
  0x1a   : > { %p3784_p12 = pnand %p4240_p9, %p3244_p11  ;;  %p3524_p4 = scmp.lt.s32.totalorder %s3515_s19, %s3515_s19 }
  0x1c   : > { %p3506_p13 = pneg %p3784_p12  ;;  %p3525_p7 = por %p3524_p4, %p3523_p3 }
  0x1e   : > { %p3518_p1 = pnand %p3516_p0, %p3506_p13 }
  0x20   : > { %p3519_p2 = pneg %p3518_p1 }
  0x22   : > { %p3526_p8 = pnand %p3525_p7, %p3519_p2 }
  0x24   : > { %3529 = shalt.err (!%p3526_p8)
}
  0x25   : > { %s3628_s22 = smov 192   ;;  %s3629_s26 = smov 12  }
  0x26   : > { %3247 = dma.hbm_to_vmem [thread:$0]  (!%p3784_p12), %s4223_s5, 6144, %s454_s23, [#allocation3], %s3628_s22, %s3628_s22, %s3629_s26  }
  0x27   : > { %s3541_s20 = scalar_lea.vmem %s488_s18, 4096  ;;  %p3549_p9 = scmp.lt.s32.totalorder %s488_s18, %s488_s18 }
  0x28   : > { %p3542_p11 = scmp.ne.s32.totalorder %s488_s18, %s3541_s20  ;;  %p3550_p6 = scmp.lt.s32.totalorder %s3541_s20, %s3541_s20 }
  0x2a   : > { %p3544_p0 = pnand %p3542_p11, %p3506_p13  ;;  %p3551_p3 = por %p3550_p6, %p3549_p9 }
  0x2c   : > { %p3545_p1 = pneg %p3544_p0 }
  0x2e   : > { %p3552_p2 = pnand %p3551_p3, %p3545_p1 }
  0x30   : > { %3555 = shalt.err (!%p3552_p2)
}
  0x31   : > { %s3630_s19 = smov 64   ;;  %s3631_s24 = smov 4  }
  0x32   : > { %3250 = dma.hbm_to_vmem [thread:$0]  (!%p3784_p12), %s4231_s13, 4096, %s488_s18, [#allocation6], %s3630_s19, %s3630_s19, %s3631_s24  }
  0x33   : > { %532 = sbr.rel (%p3776_p10) target bundleno = 6155 (0x180b), region = 88  ;;  %p4257_p4 = scmp.eq.s32.totalorder (!%p3776_p10), %s3748_s28, 0 }
  0x38   : > { %3599 = dma.done.wait (%p4257_p4), [#allocation3], 6144   ;;  %p4258_p13 = pmov %p4257_p4 }
  0x39   : > { %p4259_p6 = pmov %p4257_p4 }
  0x3a   : > { %3601 = vsyncadd (%p4258_p13), [#allocation3], 4294961152 }
  0x3b   : > { %3603 = dma.done.wait (%p4259_p6), [#allocation6], 4096   ;;  %p4260_p9 = pmov %p4257_p4 }
  0x3c   : > { %p593_p7 = scmp.lt.s32.totalorder %s3748_s28, 1  ;;  %s4261_s0 = sld [smem:[#allocation17_spill]]  ;;  %v3304_v1 = vld [vmem:[#allocation2 + $0xac] ss:$12 sps:$4 sm:$0xff]   ;;  %v3306_v2 = vld [vmem:[#allocation2 + $0xa8] ss:$12 sps:$4 sm:$0xff]   ;;  %v670_v41 = vlaneseq }
  0x3d   : > { %3605 = vsyncadd (%p4260_p9), [#allocation6], 4294963200  ;;  %v3632_v3 = vmov 0.0   ;;  %v3307_v4 = vld [vmem:[#allocation2 + $0xb0] ss:$12 sps:$4 sm:$0xff]   ;;  %813 = vmatprep.subr.bf16.mxu0 %v3304_v1  ;;  %v3633_v22 = vmov 0  }
  0x3e   : > { %s3818_s17 = scalar_select %p593_p7, %s3748_s28, 1  ;;  %3106 = vmatprep.subr.bf16.mxu1 %v3632_v3  ;;  %v3308_v5 = vld [vmem:[#allocation2 + $0x94] ss:$12 sps:$4 sm:$0xff]   ;;  %v3310_v6 = vld [vmem:[#allocation2 + $0x90] ss:$12 sps:$4 sm:$0xff]   ;;  %814 = vmatpush1.bf16.msra.mxu0 %v3306_v2  ;;  %vm3634_vm0 = vmmov 0  }
  0x3f   : > { %v3311_v7 = vld [vmem:[#allocation2 + $0x98] ss:$12 sps:$4 sm:$0xff]   ;;  %3107 = vmatpush3.bf16.msra.mxu1 %v3307_v4  ;;  %815 = vmatprep.subr.bf16.mxu0 %v3308_v5  ;;  %v3312_v12 = vld [vmem:[#allocation2 + $0x7c] ss:$12 sps:$4 sm:$0xff]   ;;  %v3315_v14 = vld [vmem:[#allocation2 + $0x80] ss:$12 sps:$4 sm:$0xff]  }
  0x40   : > { %s2814_s24 = sshll.u32 %s3818_s17, 3  ;;  %3108 = vmatprep.subr.bf16.mxu1 %v3632_v3  ;;  %v3314_v13 = vld [vmem:[#allocation2 + $0x78] ss:$12 sps:$4 sm:$0xff]   ;;  %v3318_v16 = vld [vmem:[#allocation2 + $0x60] ss:$12 sps:$4 sm:$0xff]   ;;  %845 = vmatprep.mubr.bf16.mxu0 %v3633_v22  ;;  %v3855_v42 = vshrl.u32 %v670_v41, 7 }
  0x41   : > { %v3316_v15 = vld [vmem:[#allocation2 + $0x64] ss:$12 sps:$4 sm:$0xff]   ;;  %v3319_v17 = vld [vmem:[#allocation2 + $0x68] ss:$12 sps:$4 sm:$0xff]   ;;  %v3320_v18 = vld [vmem:[#allocation2 + $0x4c] ss:$12 sps:$4 sm:$0xff]   ;;  %3122 = vmatprep.mubr.msk.bf16.mxu1 %vm3634_vm0, %v3632_v3  ;;  %3303 = vset.pattern.permute.xlu1 %v3633_v22  ;;  %s603_s21 = scalar_lea.vmem %s4220_s2, %s2814_s24 }
  0x42   : > { %s596_s20 = scalar_lea.vmem %s4261_s0, %s2814_s24  ;;  %816 = vmatpush1.bf16.msra.mxu0 %v3310_v6  ;;  %v3322_v19 = vld [vmem:[#allocation2 + $0x48] ss:$12 sps:$4 sm:$0xff]   ;;  %v3323_v20 = vld [vmem:[#allocation2 + $0x50] ss:$12 sps:$4 sm:$0xff]   ;;  %v3327_v24 = vld [vmem:[#allocation2 + $0x38] ss:$12 sps:$4 sm:$0xff]   ;;  %3302 = vset.pattern.permute.xlu0 %v3633_v22 }
  0x43   : > { %v605_v0 = vld [vmem:[%s596_s20] sm:$0xff]  ;;  %3109 = vmatpush3.bf16.msra.mxu1 %v3311_v7  ;;  %817 = vmatprep.subr.bf16.mxu0 %v3312_v12  ;;  %v3326_v23 = vld [vmem:[#allocation2 + $0x30] ss:$12 sps:$4 sm:$0xff]   ;;  %v3335_v30 = vld [vmem:[#allocation2 + $0x8] ss:$12 sps:$4 sm:$0xff]   ;;  %v3858_v43 = vsub.s32 1, %v3855_v42 }
  0x44   : > { %608 = vadd.xlane.f32.xlu0 %v605_v0  ;;  %3110 = vmatprep.subr.bf16.mxu1 %v3632_v3  ;;  %v3324_v21 = vld [vmem:[#allocation2 + $0x34] ss:$12 sps:$4 sm:$0xff]   ;;  %v3328_v25 = vld [vmem:[#allocation2 + $0x1c] ss:$12 sps:$4 sm:$0xff]   ;;  %v3330_v26 = vld [vmem:[#allocation2 + $0x18] ss:$12 sps:$4 sm:$0xff]  }
  0x45   : > { %v3331_v27 = vld [vmem:[#allocation2 + $0x20] ss:$12 sps:$4 sm:$0xff]   ;;  %v3332_v28 = vld [vmem:[#allocation2 + $0x4] ss:$12 sps:$4 sm:$0xff]   ;;  %v3861_v44 = vsub.s32 0, %v3855_v42  ;;  %v680_v46 = vsub.s32 2, %v3855_v42 }
  0x46   : > { %818 = vmatpush1.bf16.msra.mxu0 %v3314_v13  ;;  %v3334_v29 = vld [vmem:[#allocation2] ss:$12 sps:$4 sm:$0xff]   ;;  %vm904_vm1 = vcmask 523264   ;;  %s3635_s19 = smov 64   ;;  %vm967_vm2 = vcmask 1043456   ;;  %s4262_s0 = sld [smem:[#allocation18_spill]] }
  0x47   : > { %3111 = vmatpush3.bf16.msra.mxu1 %v3315_v14  ;;  %819 = vmatprep.subr.bf16.mxu0 %v3316_v15  ;;  %v2816_v35 = vld [vmem:[%s4221_s3] ss:$0 sm:$0xff]  ;;  %vm951_vm3 = vcmask 64512   ;;  %vm2665_vm4 = vcmask 7168   ;;  %s591_s29 = sand.u32 1, %s3616_s25   ;;  %s3007_s18 = sshll.u32 %s3748_s28, 4 }
  0x48   : > { %3112 = vmatprep.subr.bf16.mxu1 %v3632_v3  ;;  %v2817_v37 = vld [vmem:[%s4222_s4] ss:$0 sm:$0xff]  ;;  %s592_s22 = scalar_lea.vmem [#allocation7], %s591_s29  ;;  %s3636_s24 = smov [#allocation7]  }
  0x49   : > { %v668_v45 = vld [vmem:[%s4224_s6] sm:$0x7]  ;;  %s2708_s30 = sshll.u32 %s592_s22, 4  ;;  %s3560_s23 = sshll.u32 %s3636_s24, 4  ;;  %s2709_s30 = int_to_ptr.vmem [resolvable:$true] %s2708_s30  ;;  %s3561_s23 = int_to_ptr.vmem [resolvable:$false] %s3560_s23 }
  0x4a   : > { %820 = vmatpush1.bf16.msra.mxu0 %v3318_v16  ;;  %v677_v47 = vrot.slane %v668_v45, %v3858_v43  ;;  %v673_v50 = vrot.slane %v668_v45, %v3861_v44  ;;  %v681_v53 = vrot.slane %v668_v45, %v680_v46  ;;  %s3562_s28 = scalar_lea.vmem %s3561_s23, 32  ;;  %p3563_p11 = scmp.lt.s32.totalorder %s2709_s30, %s3561_s23 }
  0x4b   : > { %3113 = vmatpush3.bf16.msra.mxu1 %v3319_v17  ;;  %821 = vmatprep.subr.bf16.mxu0 %v3320_v18 }
  0x4c   : > { %3114 = vmatprep.subr.bf16.mxu1 %v3632_v3  ;;  %s599_s20 = scalar_lea.vmem %s4262_s0, %s3818_s17  ;;  %s4263_s0 = sld [smem:[#allocation19_spill]] }
  0x4d   : > { %v3883_v4 = vld [vmem:[%s599_s20] ss:$0 sm:$0xff]  ;;  %s3556_s17 = scalar_lea.vmem %s2709_s30, 16 }
  0x4e   : > { %822 = vmatpush1.bf16.msra.mxu0 %v3322_v19  ;;  %p3557_p10 = scmp.ne.s32.totalorder %s2709_s30, %s3556_s17  ;;  %p3564_p0 = scmp.lt.s32.totalorder %s3562_s28, %s3556_s17 }
  0x4f   : > { %3115 = vmatpush3.bf16.msra.mxu1 %v3323_v20  ;;  %823 = vmatprep.subr.bf16.mxu0 %v3324_v21 }
  0x50   : > { %3116 = vmatprep.subr.bf16.mxu1 %v3632_v3  ;;  %p3558_p12 = pnand %p3557_p10, %p3765_p5  ;;  %p3565_p1 = por %p3564_p0, %p3563_p11 }
  0x52   : > { %824 = vmatpush1.bf16.msra.mxu0 %v3326_v23  ;;  %s2706_s20 = scalar_lea.hbm %s4263_s0, %s3007_s18  ;;  %p3559_p8 = pneg %p3558_p12 }
  0x53   : > { %3117 = vmatpush3.bf16.msra.mxu1 %v3327_v24  ;;  %825 = vmatprep.subr.bf16.mxu0 %v3328_v25 }
  0x54   : > { %3118 = vmatprep.subr.bf16.mxu1 %v3632_v3  ;;  %p3566_p3 = pnand %p3565_p1, %p3559_p8 }
  0x56   : > { %826 = vmatpush1.bf16.msra.mxu0 %v3330_v26 }
  0x57   : > { %3119 = vmatpush3.bf16.msra.mxu1 %v3331_v27  ;;  %827 = vmatprep.subr.bf16.mxu0 %v3332_v28 }
  0x58   : > { %3120 = vmatprep.subr.bf16.mxu1 %v3632_v3 }
  0x5a   : > { %828 = vmatpush1.bf16.msra.mxu0 %v3334_v29 }
  0x5b   : > { %3121 = vmatpush3.bf16.msra.mxu1 %v3335_v30  ;;  %3150 = vmatprep.subr.bf16.mxu0 %v3632_v3 }
  0x5c   : > { %3126 = vmatprep.subr.bf16.mxu1 %v3632_v3 }
  0xcd   : > { %v609_v8 = vpop.xlane.xlu0 %608 }
  0xce   : > { %v611_v9 = vmul.f32 0.0078125, %v609_v8 }
  0xd0   : > { %v612_v10 = vsub.f32 %v605_v0, %v611_v9 }
  0xd2   : > { %v613_v11 = vmul.f32 %v612_v10, %v612_v10 }
  0xd4   : > { %614 = vadd.xlane.f32.xlu0 %v613_v11 }
 0x15d   : > { %v615_v31 = vpop.xlane.xlu0 %614 }
 0x15e   : > { %v616_v32 = vmul.f32 0.0078125, %v615_v31 }
 0x160   : > { %v617_v33 = vadd.f32 1e-12, %v616_v32 }
 0x162   : > { %3464 = vrsqrt.f32 %v617_v33 }
 0x16f   : > { %v3465_v34 = vpop.eup %3464 }
 0x170   : > { %v619_v36 = vmul.f32 %v3465_v34, %v612_v10 }
 0x172   : > { %v626_v38 = vmul.f32 %v2816_v35, %v619_v36 }
 0x174   : > { %v3847_v39 = vadd.f32 %v2817_v37, %v626_v38 }
 0x176   : > { %v635_v40 = vpack.c.bf16 %v3847_v39, %v3847_v39 }
 0x178   : > { %846 = vmatmul.mubr.bf16.vlgmr.msra.gmra.mxu0 %v635_v40  ;;  %3123 = vmatmul.mubr.bf16.vlgmr.msra.gmra.mxu1 %v635_v40 }
 0x179   : > { %3128 = vmatprep.mubr.msk.bf16.mxu1 %vm3634_vm0, %v3632_v3  ;;  %3166 = vmatprep.mubr.msk.bf16.mxu0 %vm3634_vm0, %v3632_v3 }
 0x238   : > { %v847_v48 = vpop.f32.mrf.mxu0  ;;  %v888_v49 = vpop.f32.mrf.mxu1 }
 0x239   : > { %v848_v57 = vadd.f32 %v847_v48, %v673_v50  ;;  %v889_v61 = vadd.f32 %v888_v49, %v681_v53  ;;  %v3336_v50 = vld [vmem:[%s4225_s7 + $0x38] sm:$0xff]   ;;  %v3339_v53 = vld [vmem:[%s4225_s7 + $0x20] sm:$0xff]  }
 0x23a   : > { %v849_v51 = vpop.f32.mrf.mxu0  ;;  %v3124_v52 = vpop.f32.mrf.mxu1  ;;  %3151 = vmatpush3.bf16.msra.mxu0 %v3336_v50  ;;  %v3373_v50 = vld [vmem:[#allocation5 + $0x28] sm:$0xff]  }
 0x23b   : > { %v850_v54 = vadd.f32 %v849_v51, %v677_v47  ;;  %v894_v63 = vmul.f32 0.125, %v848_v57  ;;  %v897_v0 = vpack.c.bf16 %v889_v61, %v889_v61  ;;  %v3337_v51 = vld [vmem:[%s4225_s7 + $0x30] sm:$0xff]   ;;  %3152 = vmatprep.subr.bf16.mxu0 %v3632_v3  ;;  %v3338_v52 = vld [vmem:[%s4225_s7 + $0x28] sm:$0xff]   ;;  %v3343_v57 = vld [vmem:[%s4225_s7] sm:$0xff]  }
 0x23c   : > { %v851_v55 = vpop.f32.mrf.mxu0  ;;  %v891_v56 = vpop.f32.mrf.mxu1 }
 0x23d   : > { %v896_v58 = vpack.c.bf16 %v850_v54, %v850_v54  ;;  %v895_v1 = vpack.c.bf16 %v894_v63, %v894_v63  ;;  %v969_v2 = vsel %vm967_vm2, %v897_v0, 0  ;;  %v3340_v54 = vld [vmem:[%s4225_s7 + $0x18] sm:$0xff]   ;;  %v3341_v55 = vld [vmem:[%s4225_s7 + $0x10] sm:$0xff]   ;;  %v3342_v56 = vld [vmem:[%s4225_s7 + $0x8] sm:$0xff]  }
 0x23e   : > { %v852_v59 = vpop.f32.mrf.mxu0  ;;  %v3125_v60 = vpop.f32.mrf.mxu1  ;;  %3153 = vmatpush3.bf16.msra.mxu0 %v3337_v51  ;;  %v3374_v51 = vld [vmem:[#allocation5 + $0x60] sm:$0xff]  }
 0x23f   : > { %v909_v62 = vsel %vm904_vm1, %v896_v58, 0  ;;  %1015 = vrot.lane.b32.xlu0 %v896_v58, %s3635_s19  ;;  %3154 = vmatprep.subr.bf16.mxu0 %v3632_v3 }
 0x240   : > { %3127 = vmatpush3.bf16.xpose.msra.mxu1 %v909_v62 }
 0x241   : > { %3132 = vmatprep.subr.bf16.mxu1 %v3632_v3 }
 0x242   : > { %3155 = vmatpush3.bf16.msra.mxu0 %v3338_v52  ;;  %v3375_v52 = vld [vmem:[#allocation5 + $0x20] sm:$0xff]  }
 0x243   : > { %3156 = vmatprep.subr.bf16.mxu0 %v3632_v3 }
 0x246   : > { %3157 = vmatpush3.bf16.msra.mxu0 %v3339_v53  ;;  %v3376_v53 = vld [vmem:[#allocation5 + $0x58] sm:$0xff]  }
 0x247   : > { %3129 = vmatmul.mubr.msk.bf16.vlgmr.msra.gmra.mxu1 %vm904_vm1, %v895_v1  ;;  %3158 = vmatprep.subr.bf16.mxu0 %v3632_v3 }
 0x248   : > { %3133 = vmatpush3.bf16.msra.mxu1 %v969_v2  ;;  %3134 = vmatprep.mubr.msk.bf16.mxu1 %vm3634_vm0, %v3632_v3 }
 0x249   : > { %3138 = vmatprep.subr.bf16.mxu1 %v3632_v3 }
 0x24a   : > { %3159 = vmatpush3.bf16.msra.mxu0 %v3340_v54  ;;  %v3377_v54 = vld [vmem:[#allocation5 + $0x18] sm:$0xff]  }
 0x24b   : > { %3160 = vmatprep.subr.bf16.mxu0 %v3632_v3 }
 0x24e   : > { %3161 = vmatpush3.bf16.msra.mxu0 %v3341_v55  ;;  %v3378_v55 = vld [vmem:[#allocation5 + $0x50] sm:$0xff]  }
 0x24f   : > { %3162 = vmatprep.subr.bf16.mxu0 %v3632_v3 }
 0x252   : > { %3163 = vmatpush3.bf16.msra.mxu0 %v3342_v56  ;;  %v3379_v56 = vld [vmem:[#allocation5 + $0x10] sm:$0xff]  }
 0x253   : > { %3164 = vmatprep.subr.bf16.mxu0 %v3632_v3 }
 0x256   : > { %3165 = vmatpush3.bf16.msra.mxu0 %v3343_v57  ;;  %v3380_v57 = vld [vmem:[#allocation5 + $0x48] sm:$0xff]  }
 0x2b1   : > { %v1016_v19 = vpop.permute.xlu0 %1015 }
 0x2b2   : > { %v1021_v21 = vsel %vm904_vm1, %v1016_v19, 0  ;;  %v3353_v19 = vld [vmem:[%s4229_s11 + $0x40] ss:$8 sps:$4 sm:$0xff]  }
 0x307   : > { %v945_v5 = vpop.f32.mrf.mxu1 }
 0x308   : > { %v946_v6 = vadd.f32 %v3883_v4, %v945_v5 }
 0x309   : > { %v3130_v7 = vpop.f32.mrf.mxu1 }
 0x30a   : > { %v952_v8 = vsel %vm951_vm3, %v946_v6, -inf }
 0x30b   : > { %953 = vmax.xlane.f32.xlu1 %v952_v8  ;;  %v948_v9 = vpop.f32.mrf.mxu1 }
 0x30d   : > { %v3131_v10 = vpop.f32.mrf.mxu1 }
 0x30e   : > { %v3344_v10 = vld [vmem:[%s4229_s11 + $0x70] ss:$8 sps:$4 sm:$0xff]  }
 0x394   : > { %v954_v11 = vpop.xlane.xlu1 %953 }
 0x395   : > { %v955_v12 = vsub.f32 %v946_v6, %v954_v11  ;;  %v3346_v11 = vld [vmem:[%s4229_s11 + $0x74] ss:$8 sps:$4 sm:$0xff]  }
 0x397   : > { %v956_v13 = vmul.f32 1.442695, %v955_v12  ;;  %v3349_v12 = vld [vmem:[%s4229_s11 + $0x64] ss:$8 sps:$4 sm:$0xff]  }
 0x399   : > { %3466 = vpow2.f32 %v956_v13 }
 0x3a6   : > { %v3467_v14 = vpop.eup %3466 }
 0x3a7   : > { %v958_v15 = vsel %vm951_vm3, %v3467_v14, 0.0 }
 0x3a8   : > { %959 = vadd.xlane.f32.xlu1 %v958_v15 }
 0x3b9   : > { %1012 = vrot.lane.b32.xlu1 %v895_v1, %s3635_s19  ;;  %v2847_v1 = vld [vmem:[%s4226_s8] ss:$0 sm:$0xff] }
 0x431   : > { %v960_v16 = vpop.xlane.xlu1 %959 }
 0x432   : > { %3468 = vrcp.f32 %v960_v16 }
 0x435   : > { %v1013_v23 = vpop.permute.xlu1 %1012 }
 0x43f   : > { %v3469_v17 = vpop.eup %3468 }
 0x440   : > { %v962_v18 = vmul.f32 %v3469_v17, %v3467_v14  ;;  %v3352_v17 = vld [vmem:[%s4229_s11 + $0x54] ss:$8 sps:$4 sm:$0xff]  }
 0x442   : > { %v963_v20 = vpack.c.bf16 %v962_v18, %v962_v18  ;;  %v3350_v18 = vld [vmem:[%s4229_s11 + $0x50] ss:$8 sps:$4 sm:$0xff]  }
 0x444   : > { %3135 = vmatmul.mubr.msk.bf16.vlgmr.msra.gmra.mxu1 %vm951_vm3, %v963_v20  ;;  %v3355_v20 = vld [vmem:[%s4229_s11 + $0x44] ss:$8 sps:$4 sm:$0xff]  }
 0x445   : > { %3139 = vmatpush3.bf16.xpose.msra.mxu1 %v1021_v21  ;;  %3140 = vmatprep.mubr.msk.bf16.mxu1 %vm3634_vm0, %v3632_v3  ;;  %v3358_v21 = vld [vmem:[%s4229_s11 + $0x34] ss:$8 sps:$4 sm:$0xff]  }
 0x446   : > { %3144 = vmatprep.subr.bf16.mxu1 %v3632_v3 }
 0x44c   : > { %3141 = vmatmul.mubr.msk.bf16.vlgmr.msra.gmra.mxu1 %vm904_vm1, %v1013_v23  ;;  %v3356_v23 = vld [vmem:[%s4229_s11 + $0x30] ss:$8 sps:$4 sm:$0xff]  }
 0x44d   : > { %3146 = vmatprep.mubr.msk.bf16.mxu1 %vm3634_vm0, %v3632_v3 }
 0x504   : > { %v1005_v24 = vpop.f32.mrf.mxu1 }
 0x506   : > { %v3136_v25 = vpop.f32.mrf.mxu1 }
 0x507   : > { %v3359_v25 = vld [vmem:[%s4229_s11 + $0x20] ss:$8 sps:$4 sm:$0xff]  }
 0x508   : > { %v1008_v26 = vpop.f32.mrf.mxu1 }
 0x509   : > { %v3364_v26 = vld [vmem:[%s4229_s11 + $0x14] ss:$8 sps:$4 sm:$0xff]  }
 0x50a   : > { %v3137_v27 = vpop.f32.mrf.mxu1 }
 0x50b   : > { %v3362_v27 = vld [vmem:[%s4229_s11 + $0x10] ss:$8 sps:$4 sm:$0xff]  }
 0x50c   : > { %v1057_v28 = vpop.f32.mrf.mxu1 }
 0x50d   : > { %v1058_v29 = vadd.f32 %v3883_v4, %v1057_v28  ;;  %v3367_v28 = vld [vmem:[%s4229_s11 + $0x4] ss:$8 sps:$4 sm:$0xff]  }
 0x50e   : > { %v3142_v30 = vpop.f32.mrf.mxu1 }
 0x50f   : > { %v1063_v31 = vsel %vm951_vm3, %v1058_v29, -inf }
 0x510   : > { %1064 = vmax.xlane.f32.xlu1 %v1063_v31  ;;  %v1060_v32 = vpop.f32.mrf.mxu1 }
 0x512   : > { %v3143_v33 = vpop.f32.mrf.mxu1 }
 0x599   : > { %v1065_v34 = vpop.xlane.xlu1 %1064 }
 0x59a   : > { %v1066_v35 = vsub.f32 %v1058_v29, %v1065_v34  ;;  %v3365_v29 = vld [vmem:[%s4229_s11] ss:$8 sps:$4 sm:$0xff]  }
 0x59b   : > { %v2856_v34 = vld [vmem:[%s4227_s9] ss:$0 sm:$0xff] }
 0x59c   : > { %v1067_v36 = vmul.f32 1.442695, %v1066_v35 }
 0x59e   : > { %3470 = vpow2.f32 %v1067_v36  ;;  %v2857_v36 = vld [vmem:[%s4228_s10] ss:$0 sm:$0xff] }
 0x5ab   : > { %v3471_v37 = vpop.eup %3470 }
 0x5ac   : > { %v1069_v38 = vsel %vm951_vm3, %v3471_v37, 0.0 }
 0x5ad   : > { %1070 = vadd.xlane.f32.xlu0 %v1069_v38 }
 0x5c3   : > { %1076 = vrot.lane.b32.xlu0 %v897_v0, %s3635_s19 }
 0x636   : > { %v1071_v40 = vpop.xlane.xlu0 %1070 }
 0x637   : > { %3472 = vrcp.f32 %v1071_v40 }
 0x63a   : > { %v1077_v41 = vpop.permute.xlu0 %1076 }
 0x63b   : > { %v1082_v45 = vsel %vm967_vm2, %v1077_v41, 0  ;;  %v3368_v41 = vld [vmem:[#allocation5 + $0x78] sm:$0xff]  }
 0x63c   : > { %3145 = vmatpush3.bf16.msra.mxu1 %v1082_v45  ;;  %v3369_v45 = vld [vmem:[#allocation5 + $0x38] sm:$0xff]   ;;  %3036 = vmatprep.subr.bf16.mxu0 %v3368_v41  ;;  %v3390_v41 = vld [vmem:[#allocation2 + $0x154] ss:$12 sps:$4 sm:$0xff]  }
 0x63d   : > { %1378 = vmatprep.subr.bf16.mxu1 %v3346_v11 }
 0x644   : > { %v3473_v47 = vpop.eup %3472 }
 0x645   : > { %v1073_v48 = vmul.f32 %v3473_v47, %v3471_v37  ;;  %v3370_v47 = vld [vmem:[#allocation5 + $0x70] sm:$0xff]  }
 0x647   : > { %v1074_v49 = vpack.c.bf16 %v1073_v48, %v1073_v48  ;;  %v3371_v48 = vld [vmem:[#allocation5 + $0x30] sm:$0xff]  }
 0x649   : > { %3147 = vmatmul.mubr.msk.bf16.vlgmr.msra.gmra.mxu1 %vm951_vm3, %v1074_v49  ;;  %v3372_v49 = vld [vmem:[#allocation5 + $0x68] sm:$0xff]  }
 0x64a   : > { %1410 = vmatprep.mubr.bf16.mxu1 %v3633_v22  ;;  %1379 = vmatpush1.bf16.msra.mxu1 %v3344_v10 }
 0x64b   : > { %1380 = vmatprep.subr.bf16.mxu1 %v3349_v12 }
 0x709   : > { %v1118_v58 = vpop.f32.mrf.mxu1 }
 0x70a   : > { %1125 = vrot.lane.b32.xlu1 %v1118_v58, %s3635_s19  ;;  %v3381_v58 = vld [vmem:[#allocation5 + $0x8] sm:$0xff]  }
 0x70b   : > { %v3148_v59 = vpop.f32.mrf.mxu1 }
 0x70c   : > { %v3382_v59 = vld [vmem:[#allocation5 + $0x40] sm:$0xff]  }
 0x70d   : > { %v1121_v60 = vpop.f32.mrf.mxu1 }
 0x70e   : > { %v3383_v60 = vld [vmem:[#allocation5] sm:$0xff]  }
 0x70f   : > { %v3149_v61 = vpop.f32.mrf.mxu1 }
 0x710   : > { %v1286_v61 = vld [vmem:[%s4230_s12] sm:$0x3] }
 0x77c   : > { %v1126_v62 = vpop.permute.xlu1 %1125 }
 0x77d   : > { %v1128_v63 = vsel %vm904_vm1, %v1005_v24, %v1126_v62  ;;  %v3361_v24 = vld [vmem:[%s4229_s11 + $0x24] ss:$8 sps:$4 sm:$0xff]   ;;  %v1291_v62 = vrot.slane %v1286_v61, %v3861_v44 }
 0x77e   : > { %v1129_v0 = vpack.c.bf16 %v1128_v63, %v1128_v63  ;;  %v1295_v63 = vrot.slane %v1286_v61, %v3858_v43  ;;  %v3404_v61 = vld [vmem:[#allocation2 + $0xf0] ss:$12 sps:$4 sm:$0xff]  }
 0x780   : > { %3167 = vmatmul.mubr.bf16.vlgmr.msra.gmra.mxu0 %v1129_v0 }
 0x781   : > { %3037 = vmatpush3.bf16.msra.mxu0 %v3369_v45  ;;  %v3391_v45 = vld [vmem:[#allocation2 + $0x158] ss:$12 sps:$4 sm:$0xff]  }
 0x782   : > { %3038 = vmatprep.subr.bf16.mxu0 %v3370_v47  ;;  %v3388_v47 = vld [vmem:[#allocation2 + $0x150] ss:$12 sps:$4 sm:$0xff]  }
 0x785   : > { %3039 = vmatpush3.bf16.msra.mxu0 %v3371_v48 }
 0x786   : > { %3040 = vmatprep.subr.bf16.mxu0 %v3372_v49 }
 0x789   : > { %3041 = vmatpush3.bf16.msra.mxu0 %v3373_v50 }
 0x78a   : > { %3042 = vmatprep.subr.bf16.mxu0 %v3374_v51  ;;  %v3394_v51 = vld [vmem:[#allocation2 + $0x13c] ss:$12 sps:$4 sm:$0xff]  }
 0x78d   : > { %3043 = vmatpush3.bf16.msra.mxu0 %v3375_v52  ;;  %v3392_v52 = vld [vmem:[#allocation2 + $0x138] ss:$12 sps:$4 sm:$0xff]  }
 0x78e   : > { %3044 = vmatprep.subr.bf16.mxu0 %v3376_v53  ;;  %v3395_v53 = vld [vmem:[#allocation2 + $0x140] ss:$12 sps:$4 sm:$0xff]  }
 0x791   : > { %3045 = vmatpush3.bf16.msra.mxu0 %v3377_v54  ;;  %v3396_v54 = vld [vmem:[#allocation2 + $0x120] ss:$12 sps:$4 sm:$0xff]  }
 0x792   : > { %3046 = vmatprep.subr.bf16.mxu0 %v3378_v55  ;;  %v3398_v55 = vld [vmem:[#allocation2 + $0x124] ss:$12 sps:$4 sm:$0xff]  }
 0x795   : > { %3047 = vmatpush3.bf16.msra.mxu0 %v3379_v56  ;;  %v3399_v56 = vld [vmem:[#allocation2 + $0x128] ss:$12 sps:$4 sm:$0xff]  }
 0x796   : > { %3048 = vmatprep.subr.bf16.mxu0 %v3380_v57  ;;  %v3402_v57 = vld [vmem:[#allocation2 + $0x10c] ss:$12 sps:$4 sm:$0xff]  }
 0x799   : > { %3049 = vmatpush3.bf16.msra.mxu0 %v3381_v58  ;;  %v3400_v58 = vld [vmem:[#allocation2 + $0x108] ss:$12 sps:$4 sm:$0xff]  }
 0x79a   : > { %3050 = vmatprep.subr.bf16.mxu0 %v3382_v59  ;;  %v3403_v59 = vld [vmem:[#allocation2 + $0x110] ss:$12 sps:$4 sm:$0xff]  }
 0x79d   : > { %3051 = vmatpush3.bf16.msra.mxu0 %v3383_v60  ;;  %v3406_v60 = vld [vmem:[#allocation2 + $0xf4] ss:$12 sps:$4 sm:$0xff]  }
 0x79e   : > { %3170 = vmatprep.subr.bf16.mxu0 %v3632_v3 }
 0x840   : > { %v1235_v2 = vpop.f32.mrf.mxu0 }
 0x841   : > { %v1236_v5 = vadd.f32 %v2847_v1, %v1235_v2 }
 0x842   : > { %v3168_v6 = vpop.f32.mrf.mxu0 }
 0x843   : > { %v1241_v7 = vadd.f32 %v1236_v5, %v3847_v39  ;;  %v3347_v39 = vld [vmem:[%s4229_s11 + $0x60] ss:$8 sps:$4 sm:$0xff]  }
 0x844   : > { %v1238_v8 = vpop.f32.mrf.mxu0  ;;  %1381 = vmatpush1.bf16.msra.mxu1 %v3347_v39 }
 0x845   : > { %1244 = vadd.xlane.f32.xlu1 %v1241_v7  ;;  %1382 = vmatprep.subr.bf16.mxu1 %v3352_v17 }
 0x846   : > { %v3169_v9 = vpop.f32.mrf.mxu0 }
 0x848   : > { %1383 = vmatpush1.bf16.msra.mxu1 %v3350_v18 }
 0x849   : > { %1384 = vmatprep.subr.bf16.mxu1 %v3355_v20 }
 0x84c   : > { %1385 = vmatpush1.bf16.msra.mxu1 %v3353_v19 }
 0x84d   : > { %1386 = vmatprep.subr.bf16.mxu1 %v3358_v21 }
 0x850   : > { %1387 = vmatpush1.bf16.msra.mxu1 %v3356_v23 }
 0x851   : > { %1388 = vmatprep.subr.bf16.mxu1 %v3361_v24 }
 0x854   : > { %1389 = vmatpush1.bf16.msra.mxu1 %v3359_v25 }
 0x855   : > { %1390 = vmatprep.subr.bf16.mxu1 %v3364_v26 }
 0x858   : > { %1391 = vmatpush1.bf16.msra.mxu1 %v3362_v27 }
 0x859   : > { %1392 = vmatprep.subr.bf16.mxu1 %v3367_v28 }
 0x85c   : > { %1393 = vmatpush1.bf16.msra.mxu1 %v3365_v29  ;;  %v2874_v29 = vld [vmem:[%s4232_s14] ss:$0 sm:$0xff] }
 0x8ce   : > { %v1245_v13 = vpop.xlane.xlu1 %1244 }
 0x8cf   : > { %v1246_v14 = vmul.f32 0.0078125, %v1245_v13 }
 0x8d1   : > { %v1247_v15 = vsub.f32 %v1241_v7, %v1246_v14 }
 0x8d3   : > { %v1248_v16 = vmul.f32 %v1247_v15, %v1247_v15 }
 0x8d5   : > { %1249 = vadd.xlane.f32.xlu0 %v1248_v16 }
 0x95e   : > { %v1250_v30 = vpop.xlane.xlu0 %1249 }
 0x95f   : > { %v1251_v31 = vmul.f32 0.0078125, %v1250_v30 }
 0x961   : > { %v1252_v32 = vadd.f32 1e-12, %v1251_v31 }
 0x963   : > { %3474 = vrsqrt.f32 %v1252_v32 }
 0x970   : > { %v3475_v33 = vpop.eup %3474 }
 0x971   : > { %v1254_v35 = vmul.f32 %v3475_v33, %v1247_v15 }
 0x973   : > { %v1261_v37 = vmul.f32 %v2856_v34, %v1254_v35 }
 0x975   : > { %v3995_v38 = vadd.f32 %v2857_v36, %v1261_v37  ;;  %v3384_v36 = vld [vmem:[#allocation2 + $0x168] ss:$12 sps:$4 sm:$0xff]   ;;  %v3386_v37 = vld [vmem:[#allocation2 + $0x16c] ss:$12 sps:$4 sm:$0xff]  }
 0x976   : > { %1822 = vmatprep.subr.bf16.mxu1 %v3386_v37 }
 0x977   : > { %v1269_v40 = vpack.c.bf16 %v3995_v38, %v3995_v38 }
 0x979   : > { %1411 = vmatmul.mubr.bf16.vlgmr.msra.gmra.mxu1 %v1269_v40  ;;  %v3387_v40 = vld [vmem:[#allocation2 + $0x170] ss:$12 sps:$4 sm:$0xff]  }
 0x97a   : > { %1854 = vmatprep.mubr.bf16.mxu1 %v3633_v22  ;;  %1823 = vmatpush1.bf16.msra.mxu1 %v3384_v36 }
 0x97b   : > { %1824 = vmatprep.subr.bf16.mxu1 %v3390_v41 }
 0x97e   : > { %1825 = vmatpush1.bf16.msra.mxu1 %v3388_v47 }
 0x97f   : > { %1826 = vmatprep.subr.bf16.mxu1 %v3394_v51 }
 0x982   : > { %1827 = vmatpush1.bf16.msra.mxu1 %v3392_v52 }
 0x983   : > { %1828 = vmatprep.subr.bf16.mxu1 %v3398_v55 }
 0x986   : > { %1829 = vmatpush1.bf16.msra.mxu1 %v3396_v54 }
 0x987   : > { %1830 = vmatprep.subr.bf16.mxu1 %v3402_v57 }
 0x98a   : > { %1831 = vmatpush1.bf16.msra.mxu1 %v3400_v58 }
 0x98b   : > { %1832 = vmatprep.subr.bf16.mxu1 %v3406_v60 }
 0x98e   : > { %1833 = vmatpush1.bf16.msra.mxu1 %v3404_v61 }
 0xa39   : > { %v1412_v0 = vpop.f32.mrf.mxu1 }
 0xa3a   : > { %v1413_v1 = vadd.f32 %v1412_v0, %v1291_v62  ;;  %v3407_v62 = vld [vmem:[#allocation2 + $0xf8] ss:$12 sps:$4 sm:$0xff]  }
 0xa3b   : > { %v1414_v2 = vpop.f32.mrf.mxu1  ;;  %v3408_v0 = vld [vmem:[#allocation2 + $0xd8] ss:$12 sps:$4 sm:$0xff]  }
 0xa3c   : > { %v1419_v5 = vmul.f32 %v1413_v1, %v1413_v1  ;;  %v1415_v6 = vadd.f32 %v1414_v2, %v1295_v63  ;;  %v3410_v63 = vld [vmem:[#allocation2 + $0xdc] ss:$12 sps:$4 sm:$0xff]   ;;  %v3414_v2 = vld [vmem:[#allocation2 + $0xc4] ss:$12 sps:$4 sm:$0xff]  }
 0xa3d   : > { %v1416_v7 = vpop.f32.mrf.mxu1  ;;  %1834 = vmatprep.subr.bf16.mxu1 %v3410_v63 }
 0xa3e   : > { %v1421_v8 = vmul.f32 %v1419_v5, %v1413_v1  ;;  %v1420_v9 = vmul.f32 %v1415_v6, %v1415_v6  ;;  %1835 = vmatpush1.bf16.msra.mxu1 %v3408_v0  ;;  %v3412_v5 = vld [vmem:[#allocation2 + $0xc0] ss:$12 sps:$4 sm:$0xff]  }
 0xa3f   : > { %v1417_v10 = vpop.f32.mrf.mxu1  ;;  %1836 = vmatprep.subr.bf16.mxu1 %v3414_v2 }
 0xa40   : > { %v1423_v11 = vmul.f32 0.044715, %v1421_v8  ;;  %v1422_v12 = vmul.f32 %v1420_v9, %v1415_v6 }
 0xa42   : > { %v1425_v39 = vadd.f32 %v1423_v11, %v1413_v1  ;;  %v1424_v13 = vmul.f32 0.044715, %v1422_v12  ;;  %1837 = vmatpush1.bf16.msra.mxu1 %v3412_v5  ;;  %v2891_v11 = vld [vmem:[%s4233_s15] ss:$0 sm:$0xff] }
 0xa43   : > { %3190 = vmatprep.subr.bf16.mxu1 %v3632_v3 }
 0xa44   : > { %v1427_v14 = vmul.f32 0.7978846, %v1425_v39  ;;  %v1426_v15 = vadd.f32 %v1424_v13, %v1415_v6  ;;  %v2892_v39 = vld [vmem:[%s4234_s16] ss:$0 sm:$0xff] }
 0xa46   : > { %3476 = vtanh.f32 %v1427_v14  ;;  %v1428_v16 = vmul.f32 0.7978846, %v1426_v15 }
 0xa48   : > { %3478 = vtanh.f32 %v1428_v16  ;;  %v2893_v16 = vld [vmem:[%s4224_s6 + $0x3] sm:$0x7] }
 0xa53   : > { %v3477_v17 = vpop.eup %3476 }
 0xa54   : > { %v1431_v18 = vadd.f32 1.0, %v3477_v17  ;;  %v1686_v17 = vrot.slane %v2893_v16, %v3858_v43 }
 0xa55   : > { %v3479_v19 = vpop.eup %3478 }
 0xa56   : > { %v1432_v20 = vadd.f32 1.0, %v3479_v19  ;;  %v1433_v21 = vmul.f32 0.5, %v1431_v18 }
 0xa58   : > { %v1434_v23 = vmul.f32 0.5, %v1432_v20  ;;  %v1435_v24 = vmul.f32 %v1433_v21, %v1413_v1  ;;  %v3411_v1 = vld [vmem:[#allocation2 + $0xe0] ss:$12 sps:$4 sm:$0xff]   ;;  %v1682_v20 = vrot.slane %v2893_v16, %v3861_v44 }
 0xa5a   : > { %v1436_v25 = vmul.f32 %v1434_v23, %v1415_v6  ;;  %v1437_v27 = vpack.c.bf16 %v1435_v24, %v1435_v24  ;;  %v3415_v6 = vld [vmem:[#allocation2 + $0xc8] ss:$12 sps:$4 sm:$0xff]   ;;  %v1690_v24 = vrot.slane %v2893_v16, %v680_v46 }
 0xa5c   : > { %v1438_v26 = vpack.c.bf16 %v1436_v25, %v1436_v25 }
 0xa5e   : > { %1606 = vmatprep.mubr.bf16.mxu0 %v1438_v26 }
 0xa5f   : > { %1607 = vmatmul.mubr.bf16.vlgmr.msra.gmra.mxu0 %v1437_v27 }
 0xa60   : > { %3186 = vmatprep.mubr.msk.bf16.mxu0 %vm3634_vm0, %v3632_v3  ;;  %3171 = vmatpush3.bf16.msra.mxu0 %v3387_v40 }
 0xa61   : > { %3172 = vmatprep.subr.bf16.mxu0 %v3632_v3 }
 0xa64   : > { %3173 = vmatpush3.bf16.msra.mxu0 %v3391_v45 }
 0xa65   : > { %3174 = vmatprep.subr.bf16.mxu0 %v3632_v3 }
 0xa68   : > { %3175 = vmatpush3.bf16.msra.mxu0 %v3395_v53 }
 0xa69   : > { %3176 = vmatprep.subr.bf16.mxu0 %v3632_v3 }
 0xa6c   : > { %3177 = vmatpush3.bf16.msra.mxu0 %v3399_v56 }
 0xa6d   : > { %3178 = vmatprep.subr.bf16.mxu0 %v3632_v3 }
 0xa70   : > { %3179 = vmatpush3.bf16.msra.mxu0 %v3403_v59 }
 0xa71   : > { %3180 = vmatprep.subr.bf16.mxu0 %v3632_v3 }
 0xa74   : > { %3181 = vmatpush3.bf16.msra.mxu0 %v3407_v62 }
 0xa75   : > { %3182 = vmatprep.subr.bf16.mxu0 %v3632_v3 }
 0xa78   : > { %3183 = vmatpush3.bf16.msra.mxu0 %v3411_v1 }
 0xa79   : > { %3184 = vmatprep.subr.bf16.mxu0 %v3632_v3 }
 0xa7c   : > { %3185 = vmatpush3.bf16.msra.mxu0 %v3415_v6 }
 0xa7d   : > { %3214 = vmatprep.subr.bf16.mxu0 %v3632_v3 }
 0xb1f   : > { %v3052_v28 = vpop.f32.mrf.mxu0 }
 0xb21   : > { %v3053_v30 = vpop.f32.mrf.mxu0 }
 0xb22   : > { %v3054_v31 = vadd.f32 %v3053_v30, %v3052_v28 }
 0xb23   : > { %v3055_v32 = vpop.f32.mrf.mxu0 }
 0xb24   : > { %v1609_v33 = vadd.f32 %v3054_v31, %v2874_v29 }
 0xb25   : > { %v3056_v34 = vpop.f32.mrf.mxu0 }
 0xb26   : > { %v1614_v35 = vadd.f32 %v1609_v33, %v3995_v38 }
 0xb28   : > { %1617 = vadd.xlane.f32.xlu0 %v1614_v35 }
 0xbb1   : > { %v1618_v48 = vpop.xlane.xlu0 %1617 }
 0xbb2   : > { %v1619_v49 = vmul.f32 0.0078125, %v1618_v48 }
 0xbb4   : > { %v1620_v38 = vsub.f32 %v1614_v35, %v1619_v49 }
 0xbb6   : > { %v1621_v50 = vmul.f32 %v1620_v38, %v1620_v38 }
 0xbb8   : > { %1622 = vadd.xlane.f32.xlu1 %v1621_v50 }
 0xc41   : > { %v1623_v7 = vpop.xlane.xlu1 %1622 }
 0xc42   : > { %v1624_v8 = vmul.f32 0.0078125, %v1623_v7 }
 0xc44   : > { %v1625_v9 = vadd.f32 1e-12, %v1624_v8 }
 0xc46   : > { %3480 = vrsqrt.f32 %v1625_v9 }
 0xc53   : > { %v3481_v10 = vpop.eup %3480 }
 0xc54   : > { %v1627_v12 = vmul.f32 %v3481_v10, %v1620_v38 }
 0xc56   : > { %v1634_v13 = vmul.f32 %v2891_v11, %v1627_v12 }
 0xc58   : > { %v4027_v14 = vadd.f32 %v2892_v39, %v1634_v13 }
 0xc5a   : > { %v1642_v15 = vpack.c.bf16 %v4027_v14, %v4027_v14 }
 0xc5c   : > { %1855 = vmatmul.mubr.bf16.vlgmr.msra.gmra.mxu1 %v1642_v15  ;;  %3187 = vmatmul.mubr.bf16.vlgmr.msra.gmra.mxu0 %v1642_v15 }
 0xc5d   : > { %3192 = vmatprep.mubr.msk.bf16.mxu1 %vm3634_vm0, %v3632_v3  ;;  %3230 = vmatprep.mubr.msk.bf16.mxu0 %vm3634_vm0, %v3632_v3 }
 0xd1c   : > { %v1856_v18 = vpop.f32.mrf.mxu1  ;;  %v1897_v19 = vpop.f32.mrf.mxu0 }
 0xd1d   : > { %v1857_v28 = vadd.f32 %v1856_v18, %v1682_v20  ;;  %v1898_v32 = vadd.f32 %v1897_v19, %v1690_v24  ;;  %v3417_v18 = vld [vmem:[%s4225_s7 + $0x70] sm:$0xff]   ;;  %v3418_v19 = vld [vmem:[%s4225_s7 + $0x68] sm:$0xff]   ;;  %v3420_v20 = vld [vmem:[%s4225_s7 + $0x58] sm:$0xff]  }
 0xd1e   : > { %v1858_v21 = vpop.f32.mrf.mxu1  ;;  %v3188_v23 = vpop.f32.mrf.mxu0  ;;  %v3423_v24 = vld [vmem:[%s4225_s7 + $0x40] sm:$0xff]  }
 0xd1f   : > { %v1859_v25 = vadd.f32 %v1858_v21, %v1686_v17  ;;  %v1903_v34 = vmul.f32 0.125, %v1857_v28  ;;  %v1906_v35 = vpack.c.bf16 %v1898_v32, %v1898_v32  ;;  %v3416_v17 = vld [vmem:[%s4225_s7 + $0x78] sm:$0xff]   ;;  %v3421_v21 = vld [vmem:[%s4225_s7 + $0x50] sm:$0xff]   ;;  %v3422_v23 = vld [vmem:[%s4225_s7 + $0x48] sm:$0xff]  }
 0xd20   : > { %v1860_v26 = vpop.f32.mrf.mxu1  ;;  %v1900_v27 = vpop.f32.mrf.mxu0  ;;  %3215 = vmatpush3.bf16.msra.mxu0 %v3416_v17  ;;  %v3458_v17 = vld [vmem:[#allocation5 + $0xd0] sm:$0xff]  }
 0xd21   : > { %v1905_v29 = vpack.c.bf16 %v1859_v25, %v1859_v25  ;;  %v1904_v36 = vpack.c.bf16 %v1903_v34, %v1903_v34  ;;  %v1969_v37 = vsel %vm967_vm2, %v1906_v35, 0  ;;  %3216 = vmatprep.subr.bf16.mxu0 %v3632_v3 }
 0xd22   : > { %v1861_v30 = vpop.f32.mrf.mxu1  ;;  %v3189_v31 = vpop.f32.mrf.mxu0 }
 0xd23   : > { %v1911_v33 = vsel %vm904_vm1, %v1905_v29, 0 }
 0xd24   : > { %3191 = vmatpush3.bf16.xpose.msra.mxu1 %v1911_v33  ;;  %3217 = vmatpush3.bf16.msra.mxu0 %v3417_v18  ;;  %v3459_v18 = vld [vmem:[#allocation5 + $0x90] sm:$0xff]  }
 0xd25   : > { %3196 = vmatprep.subr.bf16.mxu1 %v3632_v3  ;;  %3218 = vmatprep.subr.bf16.mxu0 %v3632_v3 }
 0xd28   : > { %3219 = vmatpush3.bf16.msra.mxu0 %v3418_v19  ;;  %v3460_v19 = vld [vmem:[#allocation5 + $0xc8] sm:$0xff]  }
 0xd29   : > { %3220 = vmatprep.subr.bf16.mxu0 %v3632_v3 }
 0xd2b   : > { %3193 = vmatmul.mubr.msk.bf16.vlgmr.msra.gmra.mxu1 %vm904_vm1, %v1904_v36 }
 0xd2c   : > { %3197 = vmatpush3.bf16.msra.mxu1 %v1969_v37  ;;  %3198 = vmatprep.mubr.msk.bf16.mxu1 %vm3634_vm0, %v3632_v3 }
 0xd2d   : > { %3202 = vmatprep.subr.bf16.mxu1 %v3632_v3 }
 0xdeb   : > { %v1947_v42 = vpop.f32.mrf.mxu1 }
 0xdec   : > { %v1948_v46 = vadd.f32 %v3883_v4, %v1947_v42  ;;  %v3424_v42 = vld [vmem:[%s4229_s11 + $0xf0] ss:$8 sps:$4 sm:$0xff]  }
 0xded   : > { %v3194_v40 = vpop.f32.mrf.mxu1 }
 0xdee   : > { %v1953_v41 = vsel %vm951_vm3, %v1948_v46, -inf  ;;  %v3429_v40 = vld [vmem:[%s4229_s11 + $0xe4] ss:$8 sps:$4 sm:$0xff]  }
 0xdef   : > { %1954 = vmax.xlane.f32.xlu0 %v1953_v41  ;;  %v1950_v45 = vpop.f32.mrf.mxu1 }
 0xdf1   : > { %v3195_v47 = vpop.f32.mrf.mxu1 }
 0xe05   : > { %2015 = vrot.lane.b32.xlu0 %v1905_v29, %s3635_s19 }
 0xe78   : > { %v1955_v48 = vpop.xlane.xlu0 %1954 }
 0xe79   : > { %v1956_v49 = vsub.f32 %v1948_v46, %v1955_v48  ;;  %v3426_v46 = vld [vmem:[%s4229_s11 + $0xf4] ss:$8 sps:$4 sm:$0xff]  }
 0xe7b   : > { %v1957_v38 = vmul.f32 1.442695, %v1956_v49  ;;  %v3432_v49 = vld [vmem:[%s4229_s11 + $0xd4] ss:$8 sps:$4 sm:$0xff]  }
 0xe7c   : > { %v2016_v55 = vpop.permute.xlu0 %2015 }
 0xe7d   : > { %3482 = vpow2.f32 %v1957_v38  ;;  %v2021_v57 = vsel %vm904_vm1, %v2016_v55, 0  ;;  %v3430_v38 = vld [vmem:[%s4229_s11 + $0xd0] ss:$8 sps:$4 sm:$0xff]   ;;  %v3439_v55 = vld [vmem:[%s4229_s11 + $0xa0] ss:$8 sps:$4 sm:$0xff]  }
 0xe8a   : > { %v3483_v50 = vpop.eup %3482 }
 0xe8b   : > { %v1959_v51 = vsel %vm951_vm3, %v3483_v50, 0.0 }
 0xe8c   : > { %1960 = vadd.xlane.f32.xlu1 %v1959_v51  ;;  %v3435_v51 = vld [vmem:[%s4229_s11 + $0xc4] ss:$8 sps:$4 sm:$0xff]  }
 0xe9d   : > { %2012 = vrot.lane.b32.xlu1 %v1904_v36, %s3635_s19 }
 0xf15   : > { %v1961_v52 = vpop.xlane.xlu1 %1960 }
 0xf16   : > { %3484 = vrcp.f32 %v1961_v52  ;;  %v3438_v52 = vld [vmem:[%s4229_s11 + $0xb4] ss:$8 sps:$4 sm:$0xff]  }
 0xf19   : > { %v2013_v58 = vpop.permute.xlu1 %2012 }
 0xf23   : > { %v3485_v53 = vpop.eup %3484 }
 0xf24   : > { %v1963_v54 = vmul.f32 %v3485_v53, %v3483_v50  ;;  %v3433_v50 = vld [vmem:[%s4229_s11 + $0xc0] ss:$8 sps:$4 sm:$0xff]   ;;  %v3436_v53 = vld [vmem:[%s4229_s11 + $0xb0] ss:$8 sps:$4 sm:$0xff]  }
 0xf26   : > { %v1964_v56 = vpack.c.bf16 %v1963_v54, %v1963_v54  ;;  %v3441_v54 = vld [vmem:[%s4229_s11 + $0xa4] ss:$8 sps:$4 sm:$0xff]  }
 0xf28   : > { %3199 = vmatmul.mubr.msk.bf16.vlgmr.msra.gmra.mxu1 %vm951_vm3, %v1964_v56  ;;  %v3444_v56 = vld [vmem:[%s4229_s11 + $0x94] ss:$8 sps:$4 sm:$0xff]  }
 0xf29   : > { %3203 = vmatpush3.bf16.xpose.msra.mxu1 %v2021_v57  ;;  %3204 = vmatprep.mubr.msk.bf16.mxu1 %vm3634_vm0, %v3632_v3  ;;  %v3442_v57 = vld [vmem:[%s4229_s11 + $0x90] ss:$8 sps:$4 sm:$0xff]  }
 0xf2a   : > { %3208 = vmatprep.subr.bf16.mxu1 %v3632_v3 }
 0xf30   : > { %3205 = vmatmul.mubr.msk.bf16.vlgmr.msra.gmra.mxu1 %vm904_vm1, %v2013_v58  ;;  %v3447_v58 = vld [vmem:[%s4229_s11 + $0x84] ss:$8 sps:$4 sm:$0xff]  }
 0xf31   : > { %3210 = vmatprep.mubr.msk.bf16.mxu1 %vm3634_vm0, %v3632_v3 }
 0xfe8   : > { %v2005_v59 = vpop.f32.mrf.mxu1 }
 0xfea   : > { %v3200_v60 = vpop.f32.mrf.mxu1 }
 0xfec   : > { %v2008_v61 = vpop.f32.mrf.mxu1 }
 0xfee   : > { %v3201_v62 = vpop.f32.mrf.mxu1 }
 0xff0   : > { %v2057_v63 = vpop.f32.mrf.mxu1 }
 0xff1   : > { %v2058_v0 = vadd.f32 %v3883_v4, %v2057_v63 }
 0xff2   : > { %v3206_v1 = vpop.f32.mrf.mxu1 }
 0xff3   : > { %v2063_v2 = vsel %vm951_vm3, %v2058_v0, -inf }
 0xff4   : > { %2064 = vmax.xlane.f32.xlu1 %v2063_v2  ;;  %v2060_v5 = vpop.f32.mrf.mxu1  ;;  %v2951_v2 = vld [vmem:[%s4228_s10 + $0x1] ss:$0 sm:$0xff] }
 0xff6   : > { %v3207_v6 = vpop.f32.mrf.mxu1 }
0x107d   : > { %v2065_v7 = vpop.xlane.xlu1 %2064 }
0x107e   : > { %v2066_v8 = vsub.f32 %v2058_v0, %v2065_v7  ;;  %v2950_v0 = vld [vmem:[%s4227_s9 + $0x1] ss:$0 sm:$0xff] }
0x1080   : > { %v2067_v9 = vmul.f32 1.442695, %v2066_v8  ;;  %v3448_v8 = vld [vmem:[#allocation5 + $0xf8] sm:$0xff]  }
0x1082   : > { %3486 = vpow2.f32 %v2067_v9  ;;  %v3449_v9 = vld [vmem:[#allocation5 + $0xb8] sm:$0xff]  }
0x108f   : > { %v3487_v10 = vpop.eup %3486 }
0x1090   : > { %v2069_v11 = vsel %vm951_vm3, %v3487_v10, 0.0 }
0x1091   : > { %2070 = vadd.xlane.f32.xlu0 %v2069_v11  ;;  %v3451_v11 = vld [vmem:[#allocation5 + $0xb0] sm:$0xff]  }
0x10a7   : > { %2076 = vrot.lane.b32.xlu0 %v1906_v35, %s3635_s19 }
0x111a   : > { %v2071_v12 = vpop.xlane.xlu0 %2070 }
0x111b   : > { %3488 = vrcp.f32 %v2071_v12  ;;  %v3452_v12 = vld [vmem:[#allocation5 + $0xe8] sm:$0xff]  }
0x111e   : > { %v2077_v39 = vpop.permute.xlu0 %2076 }
0x111f   : > { %v2082_v4 = vsel %vm967_vm2, %v2077_v39, 0  ;;  %v3453_v39 = vld [vmem:[#allocation5 + $0xa8] sm:$0xff]  }
0x1120   : > { %3209 = vmatpush3.bf16.msra.mxu1 %v2082_v4  ;;  %v3454_v4 = vld [vmem:[#allocation5 + $0xe0] sm:$0xff]  }
0x1121   : > { %2384 = vmatprep.subr.bf16.mxu1 %v3426_v46 }
0x1128   : > { %v3489_v13 = vpop.eup %3488 }
0x1129   : > { %v2073_v15 = vmul.f32 %v3489_v13, %v3487_v10  ;;  %v3450_v10 = vld [vmem:[#allocation5 + $0xf0] sm:$0xff]   ;;  %v3455_v13 = vld [vmem:[#allocation5 + $0xa0] sm:$0xff]  }
0x112b   : > { %v2074_v16 = vpack.c.bf16 %v2073_v15, %v2073_v15  ;;  %v3456_v15 = vld [vmem:[#allocation5 + $0xd8] sm:$0xff]  }
0x112d   : > { %3211 = vmatmul.mubr.msk.bf16.vlgmr.msra.gmra.mxu1 %vm951_vm3, %v2074_v16  ;;  %v3457_v16 = vld [vmem:[#allocation5 + $0x98] sm:$0xff]  }
0x112e   : > { %2416 = vmatprep.mubr.bf16.mxu1 %v3633_v22  ;;  %v3419_v22 = vld [vmem:[%s4225_s7 + $0x60] sm:$0xff]   ;;  %2385 = vmatpush1.bf16.msra.mxu1 %v3424_v42 }
0x112f   : > { %3221 = vmatpush3.bf16.msra.mxu0 %v3419_v22  ;;  %2386 = vmatprep.subr.bf16.mxu1 %v3429_v40  ;;  %v3461_v22 = vld [vmem:[#allocation5 + $0x88] sm:$0xff]  }
0x1130   : > { %3222 = vmatprep.subr.bf16.mxu0 %v3632_v3 }
0x1133   : > { %3223 = vmatpush3.bf16.msra.mxu0 %v3420_v20  ;;  %v3462_v20 = vld [vmem:[#allocation5 + $0xc0] sm:$0xff]  }
0x1134   : > { %3224 = vmatprep.subr.bf16.mxu0 %v3632_v3 }
0x1137   : > { %3225 = vmatpush3.bf16.msra.mxu0 %v3421_v21  ;;  %v3463_v21 = vld [vmem:[#allocation5 + $0x80] sm:$0xff]  }
0x1138   : > { %3226 = vmatprep.subr.bf16.mxu0 %v3632_v3 }
0x113b   : > { %3227 = vmatpush3.bf16.msra.mxu0 %v3422_v23  ;;  %v2968_v23 = vld [vmem:[%s4230_s12 + $0x2] sm:$0x3] }
0x113c   : > { %3228 = vmatprep.subr.bf16.mxu0 %v3632_v3  ;;  %v2939_v3 = vld [vmem:[%s4226_s8 + $0x1] ss:$0 sm:$0xff] }
0x113f   : > { %3229 = vmatpush3.bf16.msra.mxu0 %v3423_v24  ;;  %v2297_v24 = vrot.slane %v2968_v23, %v3861_v44 }
0x1140   : > { %3084 = vmatprep.subr.bf16.mxu0 %v3448_v8 }
0x11ed   : > { %v2118_v25 = vpop.f32.mrf.mxu1 }
0x11ee   : > { %2125 = vrot.lane.b32.xlu1 %v2118_v25, %s3635_s19  ;;  %v2301_v25 = vrot.slane %v2968_v23, %v3858_v43 }
0x11ef   : > { %v3212_v26 = vpop.f32.mrf.mxu1 }
0x11f1   : > { %v2121_v27 = vpop.f32.mrf.mxu1 }
0x11f3   : > { %v3213_v28 = vpop.f32.mrf.mxu1 }
0x1260   : > { %v2126_v29 = vpop.permute.xlu1 %2125 }
0x1261   : > { %v2128_v30 = vsel %vm904_vm1, %v2005_v59, %v2126_v29  ;;  %v3445_v59 = vld [vmem:[%s4229_s11 + $0x80] ss:$8 sps:$4 sm:$0xff]  }
0x1262   : > { %v2129_v31 = vpack.c.bf16 %v2128_v30, %v2128_v30 }
0x1264   : > { %3231 = vmatmul.mubr.bf16.vlgmr.msra.gmra.mxu0 %v2129_v31 }
0x1265   : > { %3085 = vmatpush3.bf16.msra.mxu0 %v3449_v9 }
0x1266   : > { %3086 = vmatprep.subr.bf16.mxu0 %v3450_v10 }
0x1269   : > { %3087 = vmatpush3.bf16.msra.mxu0 %v3451_v11 }
0x126a   : > { %3088 = vmatprep.subr.bf16.mxu0 %v3452_v12 }
0x126d   : > { %3089 = vmatpush3.bf16.msra.mxu0 %v3453_v39 }
0x126e   : > { %3090 = vmatprep.subr.bf16.mxu0 %v3454_v4  ;;  %v3005_v4 = vld [vmem:[%s4233_s15 + $0x1] ss:$0 sm:$0xff] }
0x1271   : > { %3091 = vmatpush3.bf16.msra.mxu0 %v3455_v13 }
0x1272   : > { %3092 = vmatprep.subr.bf16.mxu0 %v3456_v15 }
0x1275   : > { %3093 = vmatpush3.bf16.msra.mxu0 %v3457_v16  ;;  %v3006_v16 = vld [vmem:[%s4234_s16 + $0x1] ss:$0 sm:$0xff] }
0x1276   : > { %3094 = vmatprep.subr.bf16.mxu0 %v3458_v17 }
0x1279   : > { %3095 = vmatpush3.bf16.msra.mxu0 %v3459_v18 }
0x127a   : > { %3096 = vmatprep.subr.bf16.mxu0 %v3460_v19 }
0x127d   : > { %3097 = vmatpush3.bf16.msra.mxu0 %v3461_v22 }
0x127e   : > { %3098 = vmatprep.subr.bf16.mxu0 %v3462_v20 }
0x1281   : > { %3099 = vmatpush3.bf16.msra.mxu0 %v3463_v21 }
0x1324   : > { %v2237_v32 = vpop.f32.mrf.mxu0 }
0x1325   : > { %v2238_v33 = vadd.f32 %v2939_v3, %v2237_v32 }
0x1326   : > { %v3232_v34 = vpop.f32.mrf.mxu0 }
0x1327   : > { %v2243_v35 = vadd.f32 %v2238_v33, %v4027_v14  ;;  %v3427_v14 = vld [vmem:[%s4229_s11 + $0xe0] ss:$8 sps:$4 sm:$0xff]  }
0x1328   : > { %v2240_v36 = vpop.f32.mrf.mxu0  ;;  %2387 = vmatpush1.bf16.msra.mxu1 %v3427_v14 }
0x1329   : > { %2248 = vadd.xlane.f32.xlu1 %v2243_v35  ;;  %2388 = vmatprep.subr.bf16.mxu1 %v3432_v49 }
0x132a   : > { %v3233_v37 = vpop.f32.mrf.mxu0 }
0x132c   : > { %2389 = vmatpush1.bf16.msra.mxu1 %v3430_v38 }
0x132d   : > { %2390 = vmatprep.subr.bf16.mxu1 %v3435_v51 }
0x1330   : > { %2391 = vmatpush1.bf16.msra.mxu1 %v3433_v50 }
0x1331   : > { %2392 = vmatprep.subr.bf16.mxu1 %v3438_v52  ;;  %v2986_v52 = vld [vmem:[%s4232_s14 + $0x1] ss:$0 sm:$0xff] }
0x1334   : > { %2393 = vmatpush1.bf16.msra.mxu1 %v3436_v53 }
0x1335   : > { %2394 = vmatprep.subr.bf16.mxu1 %v3441_v54 }
0x1338   : > { %2395 = vmatpush1.bf16.msra.mxu1 %v3439_v55 }
0x1339   : > { %2396 = vmatprep.subr.bf16.mxu1 %v3444_v56 }
0x133c   : > { %2397 = vmatpush1.bf16.msra.mxu1 %v3442_v57 }
0x133d   : > { %2398 = vmatprep.subr.bf16.mxu1 %v3447_v58 }
0x1340   : > { %2399 = vmatpush1.bf16.msra.mxu1 %v3445_v59  ;;  %v2652_v59 = vld [vmem:[%s603_s21] sm:$0xff]  ;;  %s2696_s21 = scalar_lea.sflag [#allocation4], %s591_s29 }
0x13b2   : > { %v2249_v41 = vpop.xlane.xlu1 %2248 }
0x13b3   : > { %v2250_v45 = vmul.f32 0.0078125, %v2249_v41 }
0x13b5   : > { %v2251_v47 = vsub.f32 %v2243_v35, %v2250_v45 }
0x13b7   : > { %v2252_v48 = vmul.f32 %v2251_v47, %v2251_v47 }
0x13b9   : > { %2253 = vadd.xlane.f32.xlu0 %v2252_v48 }
0x1442   : > { %v2254_v60 = vpop.xlane.xlu0 %2253 }
0x1443   : > { %v2255_v61 = vmul.f32 0.0078125, %v2254_v60  ;;  %v2666_v60 = vsel %vm2665_vm4, %v2652_v59, 0.0 }
0x1445   : > { %v2256_v62 = vadd.f32 1e-12, %v2255_v61  ;;  %v2667_v61 = vrot.slane %v2666_v60, 4 }
0x1447   : > { %3490 = vrsqrt.f32 %v2256_v62 }
0x1454   : > { %v3491_v63 = vpop.eup %3490 }
0x1455   : > { %v2258_v1 = vmul.f32 %v3491_v63, %v2251_v47  ;;  %v2668_v63 = vadd.f32 %v2667_v61, %v2666_v60 }
0x1457   : > { %v2265_v5 = vmul.f32 %v2950_v0, %v2258_v1 }
0x1459   : > { %v4160_v6 = vadd.f32 %v2951_v2, %v2265_v5  ;;  %v2669_v2 = vrot.slane %v2668_v63, 2 }
0x145b   : > { %v2273_v7 = vpack.c.bf16 %v4160_v6, %v4160_v6 }
0x145d   : > { %2417 = vmatmul.mubr.bf16.vlgmr.msra.gmra.mxu1 %v2273_v7  ;;  %v2670_v7 = vadd.f32 %v2669_v2, %v2668_v63 }
0x151d   : > { %v2418_v26 = vpop.f32.mrf.mxu1 }
0x151e   : > { %v2419_v27 = vadd.f32 %v2418_v26, %v2297_v24 }
0x151f   : > { %v2420_v28 = vpop.f32.mrf.mxu1 }
0x1520   : > { %v2425_v29 = vmul.f32 %v2419_v27, %v2419_v27  ;;  %v2421_v30 = vadd.f32 %v2420_v28, %v2301_v25 }
0x1521   : > { %v2422_v31 = vpop.f32.mrf.mxu1 }
0x1522   : > { %v2427_v3 = vmul.f32 %v2425_v29, %v2419_v27  ;;  %v2426_v32 = vmul.f32 %v2421_v30, %v2421_v30 }
0x1523   : > { %v2423_v33 = vpop.f32.mrf.mxu1 }
0x1524   : > { %v2429_v34 = vmul.f32 0.044715, %v2427_v3  ;;  %v2428_v35 = vmul.f32 %v2426_v32, %v2421_v30 }
0x1526   : > { %v2431_v36 = vadd.f32 %v2429_v34, %v2419_v27  ;;  %v2430_v37 = vmul.f32 0.044715, %v2428_v35 }
0x1528   : > { %v2433_v42 = vmul.f32 0.7978846, %v2431_v36  ;;  %v2432_v46 = vadd.f32 %v2430_v37, %v2421_v30 }
0x152a   : > { %3492 = vtanh.f32 %v2433_v42  ;;  %v2434_v40 = vmul.f32 0.7978846, %v2432_v46 }
0x152c   : > { %3494 = vtanh.f32 %v2434_v40 }
0x1537   : > { %v3493_v44 = vpop.eup %3492 }
0x1538   : > { %v2437_v43 = vadd.f32 1.0, %v3493_v44 }
0x1539   : > { %v3495_v14 = vpop.eup %3494 }
0x153a   : > { %v2438_v41 = vadd.f32 1.0, %v3495_v14  ;;  %v2439_v45 = vmul.f32 0.5, %v2437_v43 }
0x153c   : > { %v2440_v47 = vmul.f32 0.5, %v2438_v41  ;;  %v2441_v48 = vmul.f32 %v2439_v45, %v2419_v27 }
0x153e   : > { %v2442_v49 = vmul.f32 %v2440_v47, %v2421_v30  ;;  %v2443_v50 = vpack.c.bf16 %v2441_v48, %v2441_v48 }
0x1540   : > { %v2444_v38 = vpack.c.bf16 %v2442_v49, %v2442_v49 }
0x1542   : > { %2614 = vmatprep.mubr.bf16.mxu0 %v2444_v38 }
0x1543   : > { %2615 = vmatmul.mubr.bf16.vlgmr.msra.gmra.mxu0 %v2443_v50 }
0x1603   : > { %v3100_v51 = vpop.f32.mrf.mxu0 }
0x1605   : > { %v3101_v53 = vpop.f32.mrf.mxu0 }
0x1606   : > { %v3102_v54 = vadd.f32 %v3101_v53, %v3100_v51 }
0x1607   : > { %v3103_v55 = vpop.f32.mrf.mxu0 }
0x1608   : > { %v2617_v56 = vadd.f32 %v3102_v54, %v2986_v52 }
0x1609   : > { %v3104_v57 = vpop.f32.mrf.mxu0 }
0x160a   : > { %v2622_v58 = vadd.f32 %v2617_v56, %v4160_v6  ;;  %v2671_v6 = vrot.slane %v2670_v7, 1 }
0x160c   : > { %2627 = vadd.xlane.f32.xlu0 %v2622_v58  ;;  %v2672_v8 = vadd.f32 %v2671_v6, %v2670_v7 }
0x160e   : > { %v2673_v9 = vmax.f32 %v2672_v8, 1e-09 }
0x1622   : > { %2655 = vperm.xlu0 %3302, %v2652_v59  }
0x1695   : > { %v2628_v62 = vpop.xlane.xlu0 %2627 }
0x1696   : > { %v2629_v0 = vmul.f32 0.0078125, %v2628_v62 }
0x1698   : > { %v2630_v1 = vsub.f32 %v2622_v58, %v2629_v0 }
0x169a   : > { %v2631_v5 = vmul.f32 %v2630_v1, %v2630_v1 }
0x169c   : > { %2632 = vadd.xlane.f32.xlu1 %v2631_v5 }
0x169d   : > { %v2656_v18 = vpop.permute.xlu0 %2655 }
0x16ad   : > { %2676 = vperm.xlu1 %3303, %v2673_v9  }
0x1725   : > { %v2633_v10 = vpop.xlane.xlu1 %2632 }
0x1726   : > { %v2634_v11 = vmul.f32 0.0078125, %v2633_v10 }
0x1728   : > { %v2635_v12 = vadd.f32 1e-12, %v2634_v11 }
0x1729   : > { %v2677_v15 = vpop.permute.xlu1 %2676 }
0x172a   : > { %3496 = vrsqrt.f32 %v2635_v12 }
0x172b   : > { %3498 = vrcp.f32 %v2677_v15 }
0x1737   : > { %v3497_v39 = vpop.eup %3496 }
0x1738   : > { %v2637_v13 = vmul.f32 %v3497_v39, %v2630_v1  ;;  %v3499_v26 = vpop.eup %3498 }
0x173a   : > { %v2644_v17 = vmul.f32 %v3005_v4, %v2637_v13 }
0x173c   : > { %v2651_v19 = vadd.f32 %v3006_v16, %v2644_v17 }
0x173e   : > { %v2658_v22 = vmul.f32 %v2656_v18, %v2651_v19 }
0x1740   : > { %v2659_v20 = vrot.slane %v2658_v22, 4 }
0x1742   : > { %v2660_v21 = vadd.f32 %v2659_v20, %v2658_v22 }
0x1744   : > { %v2661_v23 = vrot.slane %v2660_v21, 2 }
0x1746   : > { %v2662_v24 = vadd.f32 %v2661_v23, %v2660_v21 }
0x1748   : > { %v2663_v25 = vrot.slane %v2662_v24, 1 }
0x174a   : > { %v2664_v27 = vadd.f32 %v2663_v25, %v2662_v24 }
0x174c   : > { %v2680_v28 = vmul.f32 %v3499_v26, %v2664_v27 }
0x174e   : > { %v2681_v29 = vmul.f32 %v2680_v28, %v2680_v28 }
0x1750   : > { %2682 = vadd.xlane.f32.xlu1 %v2681_v29 }
0x17d9   : > { %v2683_v30 = vpop.xlane.xlu1 %2682 }
0x17da   : > { %3500 = vrsqrt.f32 %v2683_v30  ;;  %vm2686_vm5 = vcmp.eq.f32.partialorder %v2683_v30, inf  ;;  %v2689_v32 = vand.u32 2147483648, %v2683_v30  ;;  %vm2688_vm6 = vcmp.eq.f32.partialorder %v2683_v30, 0.0 }
0x17e7   : > { %v3501_v31 = vpop.eup %3500 }
0x17e8   : > { %v2685_v3 = vmul.f32 %v3501_v31, %v2683_v30 }
0x17ea   : > { %v2687_v33 = vsel %vm2686_vm5, %v2683_v30, %v2685_v3 }
0x17eb   : > { %v2690_v34 = vsel %vm2688_vm6, %v2689_v32, %v2687_v33 }
0x17ec   : > { %v2691_v35 = vmax.f32 %v2690_v34, 1e-12 }
0x17ee   : > { %3502 = vrcp.f32 %v2691_v35 }
0x17fb   : > { %v3503_v36 = vpop.eup %3502 }
0x17fc   : > { %v2693_v37 = vmul.f32 %v3503_v36, %v2680_v28 }
0x17fe   : > { %2694 = vst [vmem:[%s592_s22] sm:$0x1] %v2693_v37 }
0x17ff   : > { %3569 = shalt.err (!%p3566_p3)
}
0x1800   : > { %s3570_s19 = scalar_lea.hbm %s2706_s20, 16  ;;  %s3574_s22 = scalar_lea.hbm %s4263_s0, 32 }
0x1801   : > { %p3571_p2 = scmp.ne.s32.totalorder %s2706_s20, %s3570_s19  ;;  %p3575_p6 = scmp.lt.s32.totalorder %s2706_s20, %s4263_s0 }
0x1802   : > { %p3576_p9 = scmp.lt.s32.totalorder %s3574_s22, %s3570_s19 }
0x1803   : > { %p3572_p4 = pnand %p3571_p2, %p3765_p5 }
0x1804   : > { %p3577_p7 = por %p3576_p9, %p3575_p6 }
0x1805   : > { %p3573_p13 = pneg %p3572_p4 }
0x1807   : > { %p3578_p10 = pnand %p3577_p7, %p3573_p13 }
0x1809   : > { %3581 = shalt.err (!%p3578_p10)
}
0x180a   : > { %3242 = dma.vmem_to_hbm [thread:$0]  (%p3765_p5), %s2709_s30, 16, %s2706_s20, %s2696_s21  }
0x180b PF: > { %s4264_s17 = sld [smem:[#allocation13_spill]] }
0x180c   : > { %s4265_s24 = sld [smem:[#allocation11_spill]] }
0x180d   : > { %s4266_s23 = sld [smem:[#allocation16_spill]] }
0x1811   : > { %p3259_p12 = scmp.ge.s32.totalorder %s4264_s17, 2 }
0x1812   : > { %s2720_s28 = sand.u32 1, %s4265_s24  }
0x1813   : > { %p4267_p8 = scmp.ne.s32.totalorder %s4266_s23, 0  ;;  %s2721_s29 = scalar_lea.sflag [#allocation4], %s2720_s28 }
0x1815   : > { %p3252_p11 = pnand %p3259_p12, %p4267_p8 }
0x1817   : > { %p3253_p0 = pneg %p3252_p11 }
0x1819   : > { %3607 = dma.done.wait (%p3253_p0), %s2721_s29, 16  }
0x181a   : > { %3609 = vsyncadd (%p3253_p0), %s2721_s29, 4294967280  ;;  %s4268_s27 = sld [smem:[#allocation14_spill]]  ;;  %s4271_s24 = smov %s3616_s25 }
0x181b   : > { %s4269_s19 = sld [smem:[#allocation12_spill]] }
0x181c   : > { %s4270_s26 = sld [smem:[#allocation15_spill]] }
0x1820   : > { %p29_p1 = scmp.ge.s32.totalorder %s4268_s27, 4  }
0x1821   : > { %s4272_s25 = smov %s4269_s19 }
0x1822   :  { %31 = sbr.rel (!%p29_p1) target bundleno = 9 (0x9), region = 150 }
0x1827   :  { %2725 = vsyncpa [#allocation3], 1 }
0x1828   :  { %2727 = vsyncpa [#allocation3 + $0x1], 1 }
0x1829   :  { %2728 = vsyncpa [#allocation6], 1 }
0x182a   :  { %2729 = vsyncpa [#allocation4], 1 }
0x182b   :  { %2731 = vsyncpa [#allocation4 + $0x1], 1 }

</bundles_post_ra>
